<compile_context>
chip_gen: v7x
topology: tpu7x:2x2x1
jax: 0.10.0
libtpu: 0.0.40
codegen_flags: <defaults>
</compile_context>

<pallas_src>
import functools

import jax
import jax.numpy as jnp
from jax import lax
from jax.experimental import pallas as pl
from jax.experimental.pallas import tpu as pltpu


def _round_up(x, m):
    return (x + m - 1) // m * m


# ----------------------------------------------------------------------------- fused kernel
def generator_kernel(x_ref, mask_ref, mean_ref, inv_std_ref,
                     w_pre_ref, b_pre_ref,
                     w_in_t_ref, b_in_t_ref, w_in_s_ref, b_in_s_ref,
                     w_res_ref, b_res_ref, w_skip_ref, b_skip_ref,
                     alpha_ref, w_end_ref, b_end_ref,
                     latents_ref, logprobs_ref,
                     *, T, n_blocks, n_layers, wn_dim):
    f32 = jnp.float32
    bf16 = jnp.bfloat16

    x = x_ref[0]            # (n_mel, T) f32, channels-first, time on lanes
    mask = mask_ref[0]      # (1, T)     f32, 1.0 on valid frames of this utterance
    mean = mean_ref[...]    # (n_mel, 1)
    inv_std = inv_std_ref[...]

    # ---- SmoothedBatchNorm1d(affine=False): stats precomputed in the XLA wrapper ----
    # TODO(synk): running-stat smoothing (momentum) and the dropouts are training-only;
    #             this is the inference (batch-stat, no dropout) path.
    xn = (x - mean) * inv_std * mask

    # ---- per-dilation time-shift helpers: static lane slice + zero pad ---------------
    # sh_minus(v)[:, t] = v[:, t-d] (0 for t<d); sh_plus(v)[:, t] = v[:, t+d] (0 for t>=T-d)
    def make_shift(d):
        if d >= T:
            zf = lambda v: jnp.zeros_like(v)
            return zf, zf

        def sh_minus(v):
            return jnp.concatenate(
                [jnp.zeros((v.shape[0], d), v.dtype), v[:, :T - d]], axis=1)

        def sh_plus(v):
            return jnp.concatenate(
                [v[:, d:], jnp.zeros((v.shape[0], d), v.dtype)], axis=1)

        return sh_minus, sh_plus

    dils = sorted(set([1] + [2 ** j for j in range(n_layers)]))
    shifts = {d: make_shift(d) for d in dils}

    # partial-padding renormalisation (kernel_size / #valid taps), once per dilation.
    # (Length-aware: counts validity from the utterance-length mask.)
    scales = {}
    for d in dils:
        sm, sp = shifts[d]
        cnt = mask + sm(mask) + sp(mask)                         # (1, T)
        scales[d] = jnp.where(cnt > 0.0, 3.0 / jnp.maximum(cnt, 1.0), 0.0)

    def dilated_stack(v, d):
        # stack [v[t-d], v[t], v[t+d]] along the contraction axis -> (3*C, T) bf16
        sm, sp = shifts[d]
        return jnp.concatenate([sm(v), v, sp(v)], axis=0).astype(bf16)

    # ---- pre conv: k=3, dilation 1, n_mel -> wn_dim ----------------------------------
    h = (jnp.dot(w_pre_ref[...], dilated_stack(xn, 1),
                 preferred_element_type=f32) * scales[1] + b_pre_ref[...]) * mask
    skip0 = jnp.zeros((wn_dim, T), f32)

    # ---- gated dilated residual stack (fori over blocks, inner dilations unrolled) ---
    def block_body(blk, carry):
        h, skip = carry
        for j in range(n_layers):                 # static unroll: dilations are static
            l = blk * n_layers + j
            d = 2 ** j
            xs3 = dilated_stack(h, d)             # (3*wn_dim, T) bf16
            a_t = (jnp.dot(w_in_t_ref[l], xs3, preferred_element_type=f32)
                   * scales[d] + b_in_t_ref[l]) * mask
            a_s = (jnp.dot(w_in_s_ref[l], xs3, preferred_element_type=f32)
                   * scales[d] + b_in_s_ref[l])
            # gated activation (cond_channels == 0); a_t masked => z == 0 on padding
            z = (jnp.tanh(a_t) * jax.nn.sigmoid(a_s)).astype(bf16)
            res = (jnp.dot(w_res_ref[l], z, preferred_element_type=f32)
                   + b_res_ref[l]) * mask
            sk = (jnp.dot(w_skip_ref[l], z, preferred_element_type=f32)
                  + b_skip_ref[l]) * mask
            h = h + alpha_ref[l] * res            # rezero residual
            skip = skip + sk
        return h, skip

    h, skip = lax.fori_loop(0, n_blocks, block_body, (h, skip0))

    # ---- output 1x1 conv wn_dim -> n_symbols (latents) + log_softmax over symbols ----
    logits = (jnp.dot(w_end_ref[...], skip.astype(bf16), preferred_element_type=f32)
              + b_end_ref[...])                   # (n_symbols, T)
    latents_ref[0] = logits
    m = jnp.max(logits, axis=0, keepdims=True)
    zc = logits - m
    lse = jnp.log(jnp.sum(jnp.exp(zc), axis=0, keepdims=True))
    logprobs_ref[0] = zc - lse


# ----------------------------------------------------------------------------- wrapper
def generator_forward(gt_mel, mel_lengths, params, *, n_blocks, n_layers, eps=1e-5):
    """gt_mel: (B, T, n_mel) float32, mel_lengths: (B,) int32.

    Returns {'log_probs': (B, T, n_symbols), 'latents': (B, T, n_symbols)}.
    (text / speaker args of the PyTorch forward are unused by its compute and omitted.)
    """
    B, T, n_mel = gt_mel.shape
    wn_dim = params["w_res"].shape[1]
    n_symbols = params["w_end"].shape[0]
    L = n_blocks * n_layers

    # pad time to a multiple of 128: lane-dense stores, whole-lane-tile shifts.
    Tp = _round_up(max(T, 128), 128)

    maskf = (jnp.arange(Tp)[None, :] < mel_lengths[:, None]).astype(jnp.float32)  # (B, Tp)
    x = jnp.transpose(gt_mel.astype(jnp.float32), (0, 2, 1))                      # (B, n_mel, T)
    x = jnp.pad(x, ((0, 0), (0, 0), (0, Tp - T)))

    # masked batch-norm statistics, computed in XLA (tiny reduce) so the kernel needs no
    # global reduction and the batch axis can be gridded/pipelined.
    m3 = maskf[:, None, :]                                         # (B, 1, Tp)
    count = jnp.maximum(jnp.sum(maskf), 1.0)
    mean = jnp.sum(x * m3, axis=(0, 2)) / count                    # (n_mel,)
    diff = (x - mean[None, :, None]) * m3
    var = jnp.sum(diff * diff, axis=(0, 2)) / count
    inv_std = lax.rsqrt(var + eps)
    mean = mean.reshape(n_mel, 1)
    inv_std = inv_std.reshape(n_mel, 1)

    mask3 = maskf.reshape(B, 1, Tp)

    def _replicated(arr):
        nd = arr.ndim

        def imap(b):
            return (0,) * nd

        return pl.BlockSpec(arr.shape, imap)

    in_specs = [
        pl.BlockSpec((1, n_mel, Tp), lambda b: (b, 0, 0)),        # x
        pl.BlockSpec((1, 1, Tp), lambda b: (b, 0, 0)),            # mask
        _replicated(mean), _replicated(inv_std),
        _replicated(params["w_pre"]), _replicated(params["b_pre"]),
        _replicated(params["w_in_t"]), _replicated(params["b_in_t"]),
        _replicated(params["w_in_s"]), _replicated(params["b_in_s"]),
        _replicated(params["w_res"]), _replicated(params["b_res"]),
        _replicated(params["w_skip"]), _replicated(params["b_skip"]),
        _replicated(params["alpha"]),
        _replicated(params["w_end"]), _replicated(params["b_end"]),
    ]
    out_specs = (
        pl.BlockSpec((1, n_symbols, Tp), lambda b: (b, 0, 0)),
        pl.BlockSpec((1, n_symbols, Tp), lambda b: (b, 0, 0)),
    )

    # rough cost / VMEM budgeting
    param_bytes = sum(int(v.size) * v.dtype.itemsize for v in params.values())
    flops_per_utt = 2 * Tp * (wn_dim * 3 * n_mel
                              + L * (2 * wn_dim * 3 * wn_dim + 2 * wn_dim * wn_dim)
                              + n_symbols * wn_dim)
    cost = pl.CostEstimate(
        flops=int(B * flops_per_utt),
        transcendentals=int(B * Tp * (2 * wn_dim * L + n_symbols)),
        bytes_accessed=int(param_bytes + B * Tp * (n_mel + 1 + 2 * n_symbols) * 4),
    )
    per_step_io = Tp * (n_mel + 1 + 2 * n_symbols) * 4
    act_bytes = Tp * wn_dim * 4 * 12           # h, skip, xs3, a_t, a_s, z, res, sk, ...
    vmem_limit = int(min(60 * 2 ** 20,
                         max(32 * 2 ** 20,
                             param_bytes + 4 * per_step_io + act_bytes + (4 << 20))))

    kern = functools.partial(generator_kernel, T=Tp, n_blocks=n_blocks,
                             n_layers=n_layers, wn_dim=wn_dim)

    latents, log_probs = pl.pallas_call(
        kern,
        grid=(B,),
        out_shape=(jax.ShapeDtypeStruct((B, n_symbols, Tp), jnp.float32),
                   jax.ShapeDtypeStruct((B, n_symbols, Tp), jnp.float32)),
        in_specs=in_specs,
        out_specs=out_specs,
        compiler_params=pltpu.CompilerParams(
            dimension_semantics=("parallel",),
            vmem_limit_bytes=vmem_limit),
        cost_estimate=cost,
    )(x, mask3, mean, inv_std,
      params["w_pre"], params["b_pre"],
      params["w_in_t"], params["b_in_t"],
      params["w_in_s"], params["b_in_s"],
      params["w_res"], params["b_res"],
      params["w_skip"], params["b_skip"],
      params["alpha"],
      params["w_end"], params["b_end"])

    latents = jnp.transpose(latents[:, :, :T], (0, 2, 1))
    log_probs = jnp.transpose(log_probs[:, :, :T], (0, 2, 1))
    return {"log_probs": log_probs, "latents": latents}


# ----------------------------------------------------------------------------- deterministic init
def init_params(key, n_mel, n_symbols, wn_dim, n_blocks, n_layers, kernel_size=3):
    assert kernel_size == 3
    L = n_blocks * n_layers
    ks = jax.random.split(key, 6)

    def w(k, shape, scale=0.1):
        return (scale * jax.random.normal(k, shape)).astype(jnp.bfloat16)

    return {
        # pre conv: taps [t-1, t, t+1] concatenated along the contraction axis
        "w_pre": w(ks[0], (wn_dim, kernel_size * n_mel)),
        "b_pre": jnp.zeros((wn_dim, 1), jnp.float32),
        # gated dilated conv, split into tanh / sigmoid halves (no lane slicing in-kernel)
        "w_in_t": w(ks[1], (L, wn_dim, kernel_size * wn_dim)),
        "b_in_t": jnp.zeros((L, wn_dim, 1), jnp.float32),
        "w_in_s": w(ks[2], (L, wn_dim, kernel_size * wn_dim)),
        "b_in_s": jnp.zeros((L, wn_dim, 1), jnp.float32),
        # 1x1 res / skip convs, split
        "w_res": w(ks[3], (L, wn_dim, wn_dim)),
        "b_res": jnp.zeros((L, wn_dim, 1), jnp.float32),
        "w_skip": w(ks[4], (L, wn_dim, wn_dim)),
        "b_skip": jnp.zeros((L, wn_dim, 1), jnp.float32),
        # rezero gains (nonzero so the residual path is numerically exercised)
        "alpha": jnp.full((L, 1, 1), 0.1, jnp.float32),
        # output 1x1 conv wn_dim -> n_symbols
        "w_end": w(ks[5], (n_symbols, wn_dim)),
        "b_end": jnp.zeros((n_symbols, 1), jnp.float32),
    }


if __name__ == "__main__":
    # hparams implied by the module
    class H:
        n_mel_channels = 16
        n_symbols = 32
        wn_dim = 32
        wn_n_blocks = 2
        wn_n_layers = 2
        mel_dropout = 0.1

    h = H()
    B, T = 2, 16

    key = jax.random.PRNGKey(0)
    k_mel, k_par = jax.random.split(key)
    gt_mel = jax.random.normal(k_mel, (B, T, h.n_mel_channels), jnp.float32)
    mel_lengths = jnp.array([16, 11], jnp.int32)

    params = init_params(k_par, h.n_mel_channels, h.n_symbols, h.wn_dim,
                         h.wn_n_blocks, h.wn_n_layers)

    out = generator_forward(gt_mel, mel_lengths, params,
                            n_blocks=h.wn_n_blocks, n_layers=h.wn_n_layers)
    out = jax.block_until_ready(out)

    assert out["log_probs"].shape == (B, T, h.n_symbols)
    assert out["latents"].shape == (B, T, h.n_symbols)
    assert bool(jnp.all(jnp.isfinite(out["log_probs"])))
    # log_softmax rows sum to 1 in prob space
    s = jnp.sum(jnp.exp(out["log_probs"]), axis=-1)
    assert bool(jnp.all(jnp.abs(s - 1.0) < 1e-3))
    print("KERNEL_OK")
</pallas_src>

<mosaic_0001>
module attributes {stable_mosaic.version = 11 : i64} {
  func.func @generator_kernel(%arg0: i32, %arg1: memref<1x16x128xf32, #tpu.memory_space<vmem>>, %arg2: memref<1x1x128xf32, #tpu.memory_space<vmem>>, %arg3: memref<16x1xf32, #tpu.memory_space<vmem>>, %arg4: memref<16x1xf32, #tpu.memory_space<vmem>>, %arg5: memref<32x48xbf16, #tpu.memory_space<vmem>>, %arg6: memref<32x1xf32, #tpu.memory_space<vmem>>, %arg7: memref<4x32x96xbf16, #tpu.memory_space<vmem>>, %arg8: memref<4x32x1xf32, #tpu.memory_space<vmem>>, %arg9: memref<4x32x96xbf16, #tpu.memory_space<vmem>>, %arg10: memref<4x32x1xf32, #tpu.memory_space<vmem>>, %arg11: memref<4x32x32xbf16, #tpu.memory_space<vmem>>, %arg12: memref<4x32x1xf32, #tpu.memory_space<vmem>>, %arg13: memref<4x32x32xbf16, #tpu.memory_space<vmem>>, %arg14: memref<4x32x1xf32, #tpu.memory_space<vmem>>, %arg15: memref<4x1x1xf32, #tpu.memory_space<vmem>>, %arg16: memref<32x32xbf16, #tpu.memory_space<vmem>>, %arg17: memref<32x1xf32, #tpu.memory_space<vmem>>, %arg18: memref<1x32x128xf32, #tpu.memory_space<vmem>>, %arg19: memref<1x32x128xf32, #tpu.memory_space<vmem>>) attributes {dimension_semantics = [#tpu.dimension_semantics<parallel>], iteration_bounds = array<i64: 2>, scalar_prefetch = 0 : i64, scratch_operands = 0 : i64, tpu.core_type = #tpu.core_type<tc>, window_params = [{transform_indices = @transform_0, window_bounds = array<i64: 1, 16, 128>}, {transform_indices = @transform_1, window_bounds = array<i64: 1, 1, 128>}, {pipeline_mode = #tpu.pipeline_mode<synchronous>, transform_indices = @transform_2, window_bounds = array<i64: 16, 1>}, {pipeline_mode = #tpu.pipeline_mode<synchronous>, transform_indices = @transform_3, window_bounds = array<i64: 16, 1>}, {pipeline_mode = #tpu.pipeline_mode<synchronous>, transform_indices = @transform_4, window_bounds = array<i64: 32, 48>}, {pipeline_mode = #tpu.pipeline_mode<synchronous>, transform_indices = @transform_5, window_bounds = array<i64: 32, 1>}, {pipeline_mode = #tpu.pipeline_mode<synchronous>, transform_indices = @transform_6, window_bounds = array<i64: 4, 32, 96>}, {pipeline_mode = #tpu.pipeline_mode<synchronous>, transform_indices = @transform_7, window_bounds = array<i64: 4, 32, 1>}, {pipeline_mode = #tpu.pipeline_mode<synchronous>, transform_indices = @transform_8, window_bounds = array<i64: 4, 32, 96>}, {pipeline_mode = #tpu.pipeline_mode<synchronous>, transform_indices = @transform_9, window_bounds = array<i64: 4, 32, 1>}, {pipeline_mode = #tpu.pipeline_mode<synchronous>, transform_indices = @transform_10, window_bounds = array<i64: 4, 32, 32>}, {pipeline_mode = #tpu.pipeline_mode<synchronous>, transform_indices = @transform_11, window_bounds = array<i64: 4, 32, 1>}, {pipeline_mode = #tpu.pipeline_mode<synchronous>, transform_indices = @transform_12, window_bounds = array<i64: 4, 32, 32>}, {pipeline_mode = #tpu.pipeline_mode<synchronous>, transform_indices = @transform_13, window_bounds = array<i64: 4, 32, 1>}, {pipeline_mode = #tpu.pipeline_mode<synchronous>, transform_indices = @transform_14, window_bounds = array<i64: 4, 1, 1>}, {pipeline_mode = #tpu.pipeline_mode<synchronous>, transform_indices = @transform_15, window_bounds = array<i64: 32, 32>}, {pipeline_mode = #tpu.pipeline_mode<synchronous>, transform_indices = @transform_16, window_bounds = array<i64: 32, 1>}, {transform_indices = @transform_17, window_bounds = array<i64: 1, 32, 128>}, {transform_indices = @transform_18, window_bounds = array<i64: 1, 32, 128>}]} {
    %c0 = arith.constant 0 : index
    %c0_0 = arith.constant 0 : index
    %c0_1 = arith.constant 0 : index
    %0 = vector.load %arg1[%c0, %c0_0, %c0_1] : memref<1x16x128xf32, #tpu.memory_space<vmem>>, vector<1x16x128xf32>
    %1 = vector.shape_cast %0 : vector<1x16x128xf32> to vector<16x128xf32>
    %c0_2 = arith.constant 0 : index
    %c0_3 = arith.constant 0 : index
    %c0_4 = arith.constant 0 : index
    %2 = vector.load %arg2[%c0_2, %c0_3, %c0_4] : memref<1x1x128xf32, #tpu.memory_space<vmem>>, vector<1x1x128xf32>
    %3 = vector.shape_cast %2 : vector<1x1x128xf32> to vector<1x128xf32>
    %c0_5 = arith.constant 0 : index
    %c0_6 = arith.constant 0 : index
    %4 = vector.load %arg3[%c0_5, %c0_6] : memref<16x1xf32, #tpu.memory_space<vmem>>, vector<16x1xf32>
    %c0_7 = arith.constant 0 : index
    %c0_8 = arith.constant 0 : index
    %5 = vector.load %arg4[%c0_7, %c0_8] : memref<16x1xf32, #tpu.memory_space<vmem>>, vector<16x1xf32>
    %6 = vector.broadcast %4 : vector<16x1xf32> to vector<16x128xf32>
    %7 = arith.subf %1, %6 : vector<16x128xf32>
    %8 = vector.broadcast %5 : vector<16x1xf32> to vector<16x128xf32>
    %9 = arith.mulf %7, %8 : vector<16x128xf32>
    %10 = vector.broadcast %3 : vector<1x128xf32> to vector<16x128xf32>
    %11 = arith.mulf %9, %10 : vector<16x128xf32>
    %cst = arith.constant 0.000000e+00 : f32
    %12 = vector.broadcast %cst : f32 to vector<1x1xf32>
    %13 = vector.extract_strided_slice %3 {offsets = [0, 0], sizes = [1, 127], strides = [1, 1]} : vector<1x128xf32> to vector<1x127xf32>
    %14 = tpu.concatenate %12, %13 in 1 : vector<1x1xf32>, vector<1x127xf32> -> vector<1x128xf32>
    %15 = arith.addf %3, %14 : vector<1x128xf32>
    %16 = vector.extract_strided_slice %3 {offsets = [0, 1], sizes = [1, 127], strides = [1, 1]} : vector<1x128xf32> to vector<1x127xf32>
    %cst_9 = arith.constant 0.000000e+00 : f32
    %17 = vector.broadcast %cst_9 : f32 to vector<1x1xf32>
    %18 = tpu.concatenate %16, %17 in 1 : vector<1x127xf32>, vector<1x1xf32> -> vector<1x128xf32>
    %19 = arith.addf %15, %18 : vector<1x128xf32>
    %cst_10 = arith.constant 0.000000e+00 : f32
    %20 = vector.broadcast %cst_10 : f32 to vector<1x128xf32>
    %21 = arith.cmpf ogt, %19, %20 : vector<1x128xf32>
    %cst_11 = arith.constant 1.000000e+00 : f32
    %22 = vector.broadcast %cst_11 : f32 to vector<1x128xf32>
    %23 = arith.maximumf %19, %22 : vector<1x128xf32>
    %cst_12 = arith.constant 3.000000e+00 : f32
    %24 = vector.broadcast %cst_12 : f32 to vector<1x128xf32>
    %25 = arith.divf %24, %23 : vector<1x128xf32>
    %cst_13 = arith.constant 0.000000e+00 : f32
    %26 = vector.broadcast %cst_13 : f32 to vector<1x128xf32>
    %27 = arith.select %21, %25, %26 : vector<1x128xi1>, vector<1x128xf32>
    %cst_14 = arith.constant 0.000000e+00 : f32
    %28 = vector.broadcast %cst_14 : f32 to vector<1x2xf32>
    %29 = vector.extract_strided_slice %3 {offsets = [0, 0], sizes = [1, 126], strides = [1, 1]} : vector<1x128xf32> to vector<1x126xf32>
    %30 = tpu.concatenate %28, %29 in 1 : vector<1x2xf32>, vector<1x126xf32> -> vector<1x128xf32>
    %31 = arith.addf %3, %30 : vector<1x128xf32>
    %32 = vector.extract_strided_slice %3 {offsets = [0, 2], sizes = [1, 126], strides = [1, 1]} : vector<1x128xf32> to vector<1x126xf32>
    %cst_15 = arith.constant 0.000000e+00 : f32
    %33 = vector.broadcast %cst_15 : f32 to vector<1x2xf32>
    %34 = tpu.concatenate %32, %33 in 1 : vector<1x126xf32>, vector<1x2xf32> -> vector<1x128xf32>
    %35 = arith.addf %31, %34 : vector<1x128xf32>
    %cst_16 = arith.constant 0.000000e+00 : f32
    %36 = vector.broadcast %cst_16 : f32 to vector<1x128xf32>
    %37 = arith.cmpf ogt, %35, %36 : vector<1x128xf32>
    %cst_17 = arith.constant 1.000000e+00 : f32
    %38 = vector.broadcast %cst_17 : f32 to vector<1x128xf32>
    %39 = arith.maximumf %35, %38 : vector<1x128xf32>
    %cst_18 = arith.constant 3.000000e+00 : f32
    %40 = vector.broadcast %cst_18 : f32 to vector<1x128xf32>
    %41 = arith.divf %40, %39 : vector<1x128xf32>
    %cst_19 = arith.constant 0.000000e+00 : f32
    %42 = vector.broadcast %cst_19 : f32 to vector<1x128xf32>
    %43 = arith.select %37, %41, %42 : vector<1x128xi1>, vector<1x128xf32>
    %c0_20 = arith.constant 0 : index
    %c0_21 = arith.constant 0 : index
    %44 = vector.load %arg5[%c0_20, %c0_21] : memref<32x48xbf16, #tpu.memory_space<vmem>>, vector<32x48xbf16>
    %cst_22 = arith.constant 0.000000e+00 : f32
    %45 = vector.broadcast %cst_22 : f32 to vector<16x1xf32>
    %46 = vector.extract_strided_slice %11 {offsets = [0, 0], sizes = [16, 127], strides = [1, 1]} : vector<16x128xf32> to vector<16x127xf32>
    %47 = tpu.concatenate %45, %46 in 1 : vector<16x1xf32>, vector<16x127xf32> -> vector<16x128xf32>
    %48 = vector.extract_strided_slice %11 {offsets = [0, 1], sizes = [16, 127], strides = [1, 1]} : vector<16x128xf32> to vector<16x127xf32>
    %cst_23 = arith.constant 0.000000e+00 : f32
    %49 = vector.broadcast %cst_23 : f32 to vector<16x1xf32>
    %50 = tpu.concatenate %48, %49 in 1 : vector<16x127xf32>, vector<16x1xf32> -> vector<16x128xf32>
    %51 = tpu.concatenate %47, %11, %50 in 0 : vector<16x128xf32>, vector<16x128xf32>, vector<16x128xf32> -> vector<48x128xf32>
    %52 = arith.truncf %51 : vector<48x128xf32> to vector<48x128xbf16>
    %cst_24 = arith.constant dense<0.000000e+00> : vector<32x128xf32>
    %53 = tpu.matmul %44, %52, %cst_24 {dimension_numbers = #tpu.dot_dimension_numbers<[1], [0], [0], [1], [0, 0, 1, 1], [], []>} : vector<32x48xbf16>, vector<48x128xbf16>, vector<32x128xf32> -> vector<32x128xf32>
    %54 = vector.broadcast %27 : vector<1x128xf32> to vector<32x128xf32>
    %55 = arith.mulf %53, %54 : vector<32x128xf32>
    %c0_25 = arith.constant 0 : index
    %c0_26 = arith.constant 0 : index
    %56 = vector.load %arg6[%c0_25, %c0_26] : memref<32x1xf32, #tpu.memory_space<vmem>>, vector<32x1xf32>
    %57 = vector.broadcast %56 : vector<32x1xf32> to vector<32x128xf32>
    %58 = arith.addf %55, %57 : vector<32x128xf32>
    %59 = vector.broadcast %3 : vector<1x128xf32> to vector<32x128xf32>
    %60 = arith.mulf %58, %59 : vector<32x128xf32>
    %cst_27 = arith.constant 0.000000e+00 : f32
    %61 = vector.broadcast %cst_27 : f32 to vector<32x128xf32>
    %c0_i32 = arith.constant 0 : i32
    %c2_i32 = arith.constant 2 : i32
    %62 = arith.addi %c0_i32, %c2_i32 : i32
    %c1_i32 = arith.constant 1 : i32
    %63:2 = scf.for %arg20 = %c0_i32 to %62 step %c1_i32 iter_args(%arg21 = %60, %arg22 = %61) -> (vector<32x128xf32>, vector<32x128xf32>)  : i32 {
      %c2_i32_42 = arith.constant 2 : i32
      %86 = arith.muli %arg20, %c2_i32_42 : i32
      %c0_i32_43 = arith.constant 0 : i32
      %87 = arith.addi %86, %c0_i32_43 : i32
      %cst_44 = arith.constant 0.000000e+00 : f32
      %88 = vector.broadcast %cst_44 : f32 to vector<32x1xf32>
      %89 = vector.extract_strided_slice %arg21 {offsets = [0, 0], sizes = [32, 127], strides = [1, 1]} : vector<32x128xf32> to vector<32x127xf32>
      %90 = tpu.concatenate %88, %89 in 1 : vector<32x1xf32>, vector<32x127xf32> -> vector<32x128xf32>
      %91 = vector.extract_strided_slice %arg21 {offsets = [0, 1], sizes = [32, 127], strides = [1, 1]} : vector<32x128xf32> to vector<32x127xf32>
      %cst_45 = arith.constant 0.000000e+00 : f32
      %92 = vector.broadcast %cst_45 : f32 to vector<32x1xf32>
      %93 = tpu.concatenate %91, %92 in 1 : vector<32x127xf32>, vector<32x1xf32> -> vector<32x128xf32>
      %94 = tpu.concatenate %90, %arg21, %93 in 0 : vector<32x128xf32>, vector<32x128xf32>, vector<32x128xf32> -> vector<96x128xf32>
      %95 = arith.truncf %94 : vector<96x128xf32> to vector<96x128xbf16>
      %96 = arith.index_cast %87 : i32 to index
      %c0_46 = arith.constant 0 : index
      %c0_47 = arith.constant 0 : index
      %97 = vector.load %arg7[%96, %c0_46, %c0_47] : memref<4x32x96xbf16, #tpu.memory_space<vmem>>, vector<1x32x96xbf16>
      %98 = vector.shape_cast %97 : vector<1x32x96xbf16> to vector<32x96xbf16>
      %cst_48 = arith.constant dense<0.000000e+00> : vector<32x128xf32>
      %99 = tpu.matmul %98, %95, %cst_48 {dimension_numbers = #tpu.dot_dimension_numbers<[1], [0], [0], [1], [0, 0, 1, 1], [], []>} : vector<32x96xbf16>, vector<96x128xbf16>, vector<32x128xf32> -> vector<32x128xf32>
      %100 = vector.broadcast %27 : vector<1x128xf32> to vector<32x128xf32>
      %101 = arith.mulf %99, %100 : vector<32x128xf32>
      %102 = arith.index_cast %87 : i32 to index
      %c0_49 = arith.constant 0 : index
      %c0_50 = arith.constant 0 : index
      %103 = vector.load %arg8[%102, %c0_49, %c0_50] : memref<4x32x1xf32, #tpu.memory_space<vmem>>, vector<1x32x1xf32>
      %104 = vector.shape_cast %103 : vector<1x32x1xf32> to vector<32x1xf32>
      %105 = vector.broadcast %104 : vector<32x1xf32> to vector<32x128xf32>
      %106 = arith.addf %101, %105 : vector<32x128xf32>
      %107 = vector.broadcast %3 : vector<1x128xf32> to vector<32x128xf32>
      %108 = arith.mulf %106, %107 : vector<32x128xf32>
      %109 = arith.index_cast %87 : i32 to index
      %c0_51 = arith.constant 0 : index
      %c0_52 = arith.constant 0 : index
      %110 = vector.load %arg9[%109, %c0_51, %c0_52] : memref<4x32x96xbf16, #tpu.memory_space<vmem>>, vector<1x32x96xbf16>
      %111 = vector.shape_cast %110 : vector<1x32x96xbf16> to vector<32x96xbf16>
      %cst_53 = arith.constant dense<0.000000e+00> : vector<32x128xf32>
      %112 = tpu.matmul %111, %95, %cst_53 {dimension_numbers = #tpu.dot_dimension_numbers<[1], [0], [0], [1], [0, 0, 1, 1], [], []>} : vector<32x96xbf16>, vector<96x128xbf16>, vector<32x128xf32> -> vector<32x128xf32>
      %113 = vector.broadcast %27 : vector<1x128xf32> to vector<32x128xf32>
      %114 = arith.mulf %112, %113 : vector<32x128xf32>
      %115 = arith.index_cast %87 : i32 to index
      %c0_54 = arith.constant 0 : index
      %c0_55 = arith.constant 0 : index
      %116 = vector.load %arg10[%115, %c0_54, %c0_55] : memref<4x32x1xf32, #tpu.memory_space<vmem>>, vector<1x32x1xf32>
      %117 = vector.shape_cast %116 : vector<1x32x1xf32> to vector<32x1xf32>
      %118 = vector.broadcast %117 : vector<32x1xf32> to vector<32x128xf32>
      %119 = arith.addf %114, %118 : vector<32x128xf32>
      %120 = math.tanh %108 : vector<32x128xf32>
      %121 = arith.negf %119 : vector<32x128xf32>
      %122 = math.exp %121 : vector<32x128xf32>
      %cst_56 = arith.constant 1.000000e+00 : f32
      %123 = vector.broadcast %cst_56 : f32 to vector<32x128xf32>
      %124 = arith.addf %123, %122 : vector<32x128xf32>
      %125 = arith.divf %123, %124 : vector<32x128xf32>
      %126 = arith.mulf %120, %125 : vector<32x128xf32>
      %127 = arith.truncf %126 : vector<32x128xf32> to vector<32x128xbf16>
      %128 = arith.index_cast %87 : i32 to index
      %c0_57 = arith.constant 0 : index
      %c0_58 = arith.constant 0 : index
      %129 = vector.load %arg11[%128, %c0_57, %c0_58] : memref<4x32x32xbf16, #tpu.memory_space<vmem>>, vector<1x32x32xbf16>
      %130 = vector.shape_cast %129 : vector<1x32x32xbf16> to vector<32x32xbf16>
      %cst_59 = arith.constant dense<0.000000e+00> : vector<32x128xf32>
      %131 = tpu.matmul %130, %127, %cst_59 {dimension_numbers = #tpu.dot_dimension_numbers<[1], [0], [0], [1], [0, 0, 1, 1], [], []>} : vector<32x32xbf16>, vector<32x128xbf16>, vector<32x128xf32> -> vector<32x128xf32>
      %132 = arith.index_cast %87 : i32 to index
      %c0_60 = arith.constant 0 : index
      %c0_61 = arith.constant 0 : index
      %133 = vector.load %arg12[%132, %c0_60, %c0_61] : memref<4x32x1xf32, #tpu.memory_space<vmem>>, vector<1x32x1xf32>
      %134 = vector.shape_cast %133 : vector<1x32x1xf32> to vector<32x1xf32>
      %135 = vector.broadcast %134 : vector<32x1xf32> to vector<32x128xf32>
      %136 = arith.addf %131, %135 : vector<32x128xf32>
      %137 = vector.broadcast %3 : vector<1x128xf32> to vector<32x128xf32>
      %138 = arith.mulf %136, %137 : vector<32x128xf32>
      %139 = arith.index_cast %87 : i32 to index
      %c0_62 = arith.constant 0 : index
      %c0_63 = arith.constant 0 : index
      %140 = vector.load %arg13[%139, %c0_62, %c0_63] : memref<4x32x32xbf16, #tpu.memory_space<vmem>>, vector<1x32x32xbf16>
      %141 = vector.shape_cast %140 : vector<1x32x32xbf16> to vector<32x32xbf16>
      %cst_64 = arith.constant dense<0.000000e+00> : vector<32x128xf32>
      %142 = tpu.matmul %141, %127, %cst_64 {dimension_numbers = #tpu.dot_dimension_numbers<[1], [0], [0], [1], [0, 0, 1, 1], [], []>} : vector<32x32xbf16>, vector<32x128xbf16>, vector<32x128xf32> -> vector<32x128xf32>
      %143 = arith.index_cast %87 : i32 to index
      %c0_65 = arith.constant 0 : index
      %c0_66 = arith.constant 0 : index
      %144 = vector.load %arg14[%143, %c0_65, %c0_66] : memref<4x32x1xf32, #tpu.memory_space<vmem>>, vector<1x32x1xf32>
      %145 = vector.shape_cast %144 : vector<1x32x1xf32> to vector<32x1xf32>
      %146 = vector.broadcast %145 : vector<32x1xf32> to vector<32x128xf32>
      %147 = arith.addf %142, %146 : vector<32x128xf32>
      %148 = vector.broadcast %3 : vector<1x128xf32> to vector<32x128xf32>
      %149 = arith.mulf %147, %148 : vector<32x128xf32>
      %150 = arith.index_cast %87 : i32 to index
      %c0_67 = arith.constant 0 : index
      %c0_68 = arith.constant 0 : index
      %151 = vector.load %arg15[%150, %c0_67, %c0_68] : memref<4x1x1xf32, #tpu.memory_space<vmem>>, vector<1x1x1xf32>
      %152 = vector.shape_cast %151 : vector<1x1x1xf32> to vector<1x1xf32>
      %153 = vector.broadcast %152 : vector<1x1xf32> to vector<32x128xf32>
      %154 = arith.mulf %153, %138 : vector<32x128xf32>
      %155 = arith.addf %arg21, %154 : vector<32x128xf32>
      %156 = arith.addf %arg22, %149 : vector<32x128xf32>
      %c2_i32_69 = arith.constant 2 : i32
      %157 = arith.muli %arg20, %c2_i32_69 : i32
      %c1_i32_70 = arith.constant 1 : i32
      %158 = arith.addi %157, %c1_i32_70 : i32
      %cst_71 = arith.constant 0.000000e+00 : f32
      %159 = vector.broadcast %cst_71 : f32 to vector<32x2xf32>
      %160 = vector.extract_strided_slice %155 {offsets = [0, 0], sizes = [32, 126], strides = [1, 1]} : vector<32x128xf32> to vector<32x126xf32>
      %161 = tpu.concatenate %159, %160 in 1 : vector<32x2xf32>, vector<32x126xf32> -> vector<32x128xf32>
      %162 = vector.extract_strided_slice %155 {offsets = [0, 2], sizes = [32, 126], strides = [1, 1]} : vector<32x128xf32> to vector<32x126xf32>
      %cst_72 = arith.constant 0.000000e+00 : f32
      %163 = vector.broadcast %cst_72 : f32 to vector<32x2xf32>
      %164 = tpu.concatenate %162, %163 in 1 : vector<32x126xf32>, vector<32x2xf32> -> vector<32x128xf32>
      %165 = tpu.concatenate %161, %155, %164 in 0 : vector<32x128xf32>, vector<32x128xf32>, vector<32x128xf32> -> vector<96x128xf32>
      %166 = arith.truncf %165 : vector<96x128xf32> to vector<96x128xbf16>
      %167 = arith.index_cast %158 : i32 to index
      %c0_73 = arith.constant 0 : index
      %c0_74 = arith.constant 0 : index
      %168 = vector.load %arg7[%167, %c0_73, %c0_74] : memref<4x32x96xbf16, #tpu.memory_space<vmem>>, vector<1x32x96xbf16>
      %169 = vector.shape_cast %168 : vector<1x32x96xbf16> to vector<32x96xbf16>
      %cst_75 = arith.constant dense<0.000000e+00> : vector<32x128xf32>
      %170 = tpu.matmul %169, %166, %cst_75 {dimension_numbers = #tpu.dot_dimension_numbers<[1], [0], [0], [1], [0, 0, 1, 1], [], []>} : vector<32x96xbf16>, vector<96x128xbf16>, vector<32x128xf32> -> vector<32x128xf32>
      %171 = vector.broadcast %43 : vector<1x128xf32> to vector<32x128xf32>
      %172 = arith.mulf %170, %171 : vector<32x128xf32>
      %173 = arith.index_cast %158 : i32 to index
      %c0_76 = arith.constant 0 : index
      %c0_77 = arith.constant 0 : index
      %174 = vector.load %arg8[%173, %c0_76, %c0_77] : memref<4x32x1xf32, #tpu.memory_space<vmem>>, vector<1x32x1xf32>
      %175 = vector.shape_cast %174 : vector<1x32x1xf32> to vector<32x1xf32>
      %176 = vector.broadcast %175 : vector<32x1xf32> to vector<32x128xf32>
      %177 = arith.addf %172, %176 : vector<32x128xf32>
      %178 = vector.broadcast %3 : vector<1x128xf32> to vector<32x128xf32>
      %179 = arith.mulf %177, %178 : vector<32x128xf32>
      %180 = arith.index_cast %158 : i32 to index
      %c0_78 = arith.constant 0 : index
      %c0_79 = arith.constant 0 : index
      %181 = vector.load %arg9[%180, %c0_78, %c0_79] : memref<4x32x96xbf16, #tpu.memory_space<vmem>>, vector<1x32x96xbf16>
      %182 = vector.shape_cast %181 : vector<1x32x96xbf16> to vector<32x96xbf16>
      %cst_80 = arith.constant dense<0.000000e+00> : vector<32x128xf32>
      %183 = tpu.matmul %182, %166, %cst_80 {dimension_numbers = #tpu.dot_dimension_numbers<[1], [0], [0], [1], [0, 0, 1, 1], [], []>} : vector<32x96xbf16>, vector<96x128xbf16>, vector<32x128xf32> -> vector<32x128xf32>
      %184 = vector.broadcast %43 : vector<1x128xf32> to vector<32x128xf32>
      %185 = arith.mulf %183, %184 : vector<32x128xf32>
      %186 = arith.index_cast %158 : i32 to index
      %c0_81 = arith.constant 0 : index
      %c0_82 = arith.constant 0 : index
      %187 = vector.load %arg10[%186, %c0_81, %c0_82] : memref<4x32x1xf32, #tpu.memory_space<vmem>>, vector<1x32x1xf32>
      %188 = vector.shape_cast %187 : vector<1x32x1xf32> to vector<32x1xf32>
      %189 = vector.broadcast %188 : vector<32x1xf32> to vector<32x128xf32>
      %190 = arith.addf %185, %189 : vector<32x128xf32>
      %191 = math.tanh %179 : vector<32x128xf32>
      %192 = arith.negf %190 : vector<32x128xf32>
      %193 = math.exp %192 : vector<32x128xf32>
      %cst_83 = arith.constant 1.000000e+00 : f32
      %194 = vector.broadcast %cst_83 : f32 to vector<32x128xf32>
      %195 = arith.addf %194, %193 : vector<32x128xf32>
      %196 = arith.divf %194, %195 : vector<32x128xf32>
      %197 = arith.mulf %191, %196 : vector<32x128xf32>
      %198 = arith.truncf %197 : vector<32x128xf32> to vector<32x128xbf16>
      %199 = arith.index_cast %158 : i32 to index
      %c0_84 = arith.constant 0 : index
      %c0_85 = arith.constant 0 : index
      %200 = vector.load %arg11[%199, %c0_84, %c0_85] : memref<4x32x32xbf16, #tpu.memory_space<vmem>>, vector<1x32x32xbf16>
      %201 = vector.shape_cast %200 : vector<1x32x32xbf16> to vector<32x32xbf16>
      %cst_86 = arith.constant dense<0.000000e+00> : vector<32x128xf32>
      %202 = tpu.matmul %201, %198, %cst_86 {dimension_numbers = #tpu.dot_dimension_numbers<[1], [0], [0], [1], [0, 0, 1, 1], [], []>} : vector<32x32xbf16>, vector<32x128xbf16>, vector<32x128xf32> -> vector<32x128xf32>
      %203 = arith.index_cast %158 : i32 to index
      %c0_87 = arith.constant 0 : index
      %c0_88 = arith.constant 0 : index
      %204 = vector.load %arg12[%203, %c0_87, %c0_88] : memref<4x32x1xf32, #tpu.memory_space<vmem>>, vector<1x32x1xf32>
      %205 = vector.shape_cast %204 : vector<1x32x1xf32> to vector<32x1xf32>
      %206 = vector.broadcast %205 : vector<32x1xf32> to vector<32x128xf32>
      %207 = arith.addf %202, %206 : vector<32x128xf32>
      %208 = vector.broadcast %3 : vector<1x128xf32> to vector<32x128xf32>
      %209 = arith.mulf %207, %208 : vector<32x128xf32>
      %210 = arith.index_cast %158 : i32 to index
      %c0_89 = arith.constant 0 : index
      %c0_90 = arith.constant 0 : index
      %211 = vector.load %arg13[%210, %c0_89, %c0_90] : memref<4x32x32xbf16, #tpu.memory_space<vmem>>, vector<1x32x32xbf16>
      %212 = vector.shape_cast %211 : vector<1x32x32xbf16> to vector<32x32xbf16>
      %cst_91 = arith.constant dense<0.000000e+00> : vector<32x128xf32>
      %213 = tpu.matmul %212, %198, %cst_91 {dimension_numbers = #tpu.dot_dimension_numbers<[1], [0], [0], [1], [0, 0, 1, 1], [], []>} : vector<32x32xbf16>, vector<32x128xbf16>, vector<32x128xf32> -> vector<32x128xf32>
      %214 = arith.index_cast %158 : i32 to index
      %c0_92 = arith.constant 0 : index
      %c0_93 = arith.constant 0 : index
      %215 = vector.load %arg14[%214, %c0_92, %c0_93] : memref<4x32x1xf32, #tpu.memory_space<vmem>>, vector<1x32x1xf32>
      %216 = vector.shape_cast %215 : vector<1x32x1xf32> to vector<32x1xf32>
      %217 = vector.broadcast %216 : vector<32x1xf32> to vector<32x128xf32>
      %218 = arith.addf %213, %217 : vector<32x128xf32>
      %219 = vector.broadcast %3 : vector<1x128xf32> to vector<32x128xf32>
      %220 = arith.mulf %218, %219 : vector<32x128xf32>
      %221 = arith.index_cast %158 : i32 to index
      %c0_94 = arith.constant 0 : index
      %c0_95 = arith.constant 0 : index
      %222 = vector.load %arg15[%221, %c0_94, %c0_95] : memref<4x1x1xf32, #tpu.memory_space<vmem>>, vector<1x1x1xf32>
      %223 = vector.shape_cast %222 : vector<1x1x1xf32> to vector<1x1xf32>
      %224 = vector.broadcast %223 : vector<1x1xf32> to vector<32x128xf32>
      %225 = arith.mulf %224, %209 : vector<32x128xf32>
      %226 = arith.addf %155, %225 : vector<32x128xf32>
      %227 = arith.addf %156, %220 : vector<32x128xf32>
      scf.yield %226, %227 : vector<32x128xf32>, vector<32x128xf32>
    }
    %c2_i32_28 = arith.constant 2 : i32
    %c0_29 = arith.constant 0 : index
    %c0_30 = arith.constant 0 : index
    %64 = vector.load %arg16[%c0_29, %c0_30] : memref<32x32xbf16, #tpu.memory_space<vmem>>, vector<32x32xbf16>
    %65 = arith.truncf %63#1 : vector<32x128xf32> to vector<32x128xbf16>
    %cst_31 = arith.constant dense<0.000000e+00> : vector<32x128xf32>
    %66 = tpu.matmul %64, %65, %cst_31 {dimension_numbers = #tpu.dot_dimension_numbers<[1], [0], [0], [1], [0, 0, 1, 1], [], []>} : vector<32x32xbf16>, vector<32x128xbf16>, vector<32x128xf32> -> vector<32x128xf32>
    %c0_32 = arith.constant 0 : index
    %c0_33 = arith.constant 0 : index
    %67 = vector.load %arg17[%c0_32, %c0_33] : memref<32x1xf32, #tpu.memory_space<vmem>>, vector<32x1xf32>
    %68 = vector.broadcast %67 : vector<32x1xf32> to vector<32x128xf32>
    %69 = arith.addf %66, %68 : vector<32x128xf32>
    %c0_34 = arith.constant 0 : index
    %c0_35 = arith.constant 0 : index
    %c0_36 = arith.constant 0 : index
    %70 = vector.load %arg18[%c0_34, %c0_35, %c0_36] : memref<1x32x128xf32, #tpu.memory_space<vmem>>, vector<1x32x128xf32>
    %71 = vector.shape_cast %70 : vector<1x32x128xf32> to vector<32x128xf32>
    %72 = vector.shape_cast %69 : vector<32x128xf32> to vector<1x32x128xf32>
    tpu.vector_store %arg18[%c0_34, %c0_35, %c0_36], %72 {strides = array<i32>} : memref<1x32x128xf32, #tpu.memory_space<vmem>>, vector<1x32x128xf32>,
    %cst_37 = arith.constant dense<0xFF800000> : vector<128xf32>
    %73 = vector.multi_reduction <maximumf>, %69, %cst_37 [0] : vector<32x128xf32> to vector<128xf32>
    %74 = vector.shape_cast %73 : vector<128xf32> to vector<1x128xf32>
    %75 = vector.broadcast %74 : vector<1x128xf32> to vector<32x128xf32>
    %76 = arith.subf %69, %75 : vector<32x128xf32>
    %77 = math.exp %76 : vector<32x128xf32>
    %cst_38 = arith.constant dense<0.000000e+00> : vector<128xf32>
    %78 = vector.multi_reduction <add>, %77, %cst_38 [0] : vector<32x128xf32> to vector<128xf32>
    %79 = vector.shape_cast %78 : vector<128xf32> to vector<1x128xf32>
    %80 = math.log %79 : vector<1x128xf32>
    %81 = vector.broadcast %80 : vector<1x128xf32> to vector<32x128xf32>
    %82 = arith.subf %76, %81 : vector<32x128xf32>
    %c0_39 = arith.constant 0 : index
    %c0_40 = arith.constant 0 : index
    %c0_41 = arith.constant 0 : index
    %83 = vector.load %arg19[%c0_39, %c0_40, %c0_41] : memref<1x32x128xf32, #tpu.memory_space<vmem>>, vector<1x32x128xf32>
    %84 = vector.shape_cast %83 : vector<1x32x128xf32> to vector<32x128xf32>
    %85 = vector.shape_cast %82 : vector<32x128xf32> to vector<1x32x128xf32>
    tpu.vector_store %arg19[%c0_39, %c0_40, %c0_41], %85 {strides = array<i32>} : memref<1x32x128xf32, #tpu.memory_space<vmem>>, vector<1x32x128xf32>,
    return
  }
  func.func @transform_0(%arg0: i32) -> (i32, i32, i32) {
    %c0_i32 = arith.constant 0 : i32
    %c0_i32_0 = arith.constant 0 : i32
    %c0_i32_1 = arith.constant 0 : i32
    return %arg0, %c0_i32, %c0_i32_0 : i32, i32, i32
  }
  func.func @transform_1(%arg0: i32) -> (i32, i32, i32) {
    %c0_i32 = arith.constant 0 : i32
    %c0_i32_0 = arith.constant 0 : i32
    %c0_i32_1 = arith.constant 0 : i32
    return %arg0, %c0_i32, %c0_i32_0 : i32, i32, i32
  }
  func.func @transform_2(%arg0: i32) -> (i32, i32) {
    %c0_i32 = arith.constant 0 : i32
    %c0_i32_0 = arith.constant 0 : i32
    %c0_i32_1 = arith.constant 0 : i32
    return %c0_i32, %c0_i32_0 : i32, i32
  }
  func.func @transform_3(%arg0: i32) -> (i32, i32) {
    %c0_i32 = arith.constant 0 : i32
    %c0_i32_0 = arith.constant 0 : i32
    %c0_i32_1 = arith.constant 0 : i32
    return %c0_i32, %c0_i32_0 : i32, i32
  }
  func.func @transform_4(%arg0: i32) -> (i32, i32) {
    %c0_i32 = arith.constant 0 : i32
    %c0_i32_0 = arith.constant 0 : i32
    %c0_i32_1 = arith.constant 0 : i32
    return %c0_i32, %c0_i32_0 : i32, i32
  }
  func.func @transform_5(%arg0: i32) -> (i32, i32) {
    %c0_i32 = arith.constant 0 : i32
    %c0_i32_0 = arith.constant 0 : i32
    %c0_i32_1 = arith.constant 0 : i32
    return %c0_i32, %c0_i32_0 : i32, i32
  }
  func.func @transform_6(%arg0: i32) -> (i32, i32, i32) {
    %c0_i32 = arith.constant 0 : i32
    %c0_i32_0 = arith.constant 0 : i32
    %c0_i32_1 = arith.constant 0 : i32
    %c0_i32_2 = arith.constant 0 : i32
    return %c0_i32, %c0_i32_0, %c0_i32_1 : i32, i32, i32
  }
  func.func @transform_7(%arg0: i32) -> (i32, i32, i32) {
    %c0_i32 = arith.constant 0 : i32
    %c0_i32_0 = arith.constant 0 : i32
    %c0_i32_1 = arith.constant 0 : i32
    %c0_i32_2 = arith.constant 0 : i32
    return %c0_i32, %c0_i32_0, %c0_i32_1 : i32, i32, i32
  }
  func.func @transform_8(%arg0: i32) -> (i32, i32, i32) {
    %c0_i32 = arith.constant 0 : i32
    %c0_i32_0 = arith.constant 0 : i32
    %c0_i32_1 = arith.constant 0 : i32
    %c0_i32_2 = arith.constant 0 : i32
    return %c0_i32, %c0_i32_0, %c0_i32_1 : i32, i32, i32
  }
  func.func @transform_9(%arg0: i32) -> (i32, i32, i32) {
    %c0_i32 = arith.constant 0 : i32
    %c0_i32_0 = arith.constant 0 : i32
    %c0_i32_1 = arith.constant 0 : i32
    %c0_i32_2 = arith.constant 0 : i32
    return %c0_i32, %c0_i32_0, %c0_i32_1 : i32, i32, i32
  }
  func.func @transform_10(%arg0: i32) -> (i32, i32, i32) {
    %c0_i32 = arith.constant 0 : i32
    %c0_i32_0 = arith.constant 0 : i32
    %c0_i32_1 = arith.constant 0 : i32
    %c0_i32_2 = arith.constant 0 : i32
    return %c0_i32, %c0_i32_0, %c0_i32_1 : i32, i32, i32
  }
  func.func @transform_11(%arg0: i32) -> (i32, i32, i32) {
    %c0_i32 = arith.constant 0 : i32
    %c0_i32_0 = arith.constant 0 : i32
    %c0_i32_1 = arith.constant 0 : i32
    %c0_i32_2 = arith.constant 0 : i32
    return %c0_i32, %c0_i32_0, %c0_i32_1 : i32, i32, i32
  }
  func.func @transform_12(%arg0: i32) -> (i32, i32, i32) {
    %c0_i32 = arith.constant 0 : i32
    %c0_i32_0 = arith.constant 0 : i32
    %c0_i32_1 = arith.constant 0 : i32
    %c0_i32_2 = arith.constant 0 : i32
    return %c0_i32, %c0_i32_0, %c0_i32_1 : i32, i32, i32
  }
  func.func @transform_13(%arg0: i32) -> (i32, i32, i32) {
    %c0_i32 = arith.constant 0 : i32
    %c0_i32_0 = arith.constant 0 : i32
    %c0_i32_1 = arith.constant 0 : i32
    %c0_i32_2 = arith.constant 0 : i32
    return %c0_i32, %c0_i32_0, %c0_i32_1 : i32, i32, i32
  }
  func.func @transform_14(%arg0: i32) -> (i32, i32, i32) {
    %c0_i32 = arith.constant 0 : i32
    %c0_i32_0 = arith.constant 0 : i32
    %c0_i32_1 = arith.constant 0 : i32
    %c0_i32_2 = arith.constant 0 : i32
    return %c0_i32, %c0_i32_0, %c0_i32_1 : i32, i32, i32
  }
  func.func @transform_15(%arg0: i32) -> (i32, i32) {
    %c0_i32 = arith.constant 0 : i32
    %c0_i32_0 = arith.constant 0 : i32
    %c0_i32_1 = arith.constant 0 : i32
    return %c0_i32, %c0_i32_0 : i32, i32
  }
  func.func @transform_16(%arg0: i32) -> (i32, i32) {
    %c0_i32 = arith.constant 0 : i32
    %c0_i32_0 = arith.constant 0 : i32
    %c0_i32_1 = arith.constant 0 : i32
    return %c0_i32, %c0_i32_0 : i32, i32
  }
  func.func @transform_17(%arg0: i32) -> (i32, i32, i32) {
    %c0_i32 = arith.constant 0 : i32
    %c0_i32_0 = arith.constant 0 : i32
    %c0_i32_1 = arith.constant 0 : i32
    return %arg0, %c0_i32, %c0_i32_0 : i32, i32, i32
  }
  func.func @transform_18(%arg0: i32) -> (i32, i32, i32) {
    %c0_i32 = arith.constant 0 : i32
    %c0_i32_0 = arith.constant 0 : i32
    %c0_i32_1 = arith.constant 0 : i32
    return %arg0, %c0_i32, %c0_i32_0 : i32, i32, i32
  }
}

</mosaic_0001>

<bundles_post_ra>
// kernel: tpu_custom_call.1
= control target key start
LH: loop header
LB: loop body
LE: loop exit
PB: predicated region body
PF: predicated region fallthrough
CT: control target
= control target key end

     0   :  { %s3735_s0 = inlined_call_operand.vmem [shape: f32[2,16,128], index: 0, kind: input, shape index: {}]   ;;  %s3736_s1 = inlined_call_operand.vmem [shape: f32[2,1,128], index: 1, kind: input, shape index: {}]   ;;  %s3737_s2 = inlined_call_operand.vmem [shape: f32[16,1], index: 2, kind: input, shape index: {}]   ;;  %s3738_s3 = inlined_call_operand.vmem [shape: f32[16,1], index: 3, kind: input, shape index: {}]   ;;  %s3739_s4 = inlined_call_operand.vmem [shape: bf16[32,48], index: 4, kind: input, shape index: {}]   ;;  %s3740_s5 = inlined_call_operand.vmem [shape: f32[32,1], index: 5, kind: input, shape index: {}]   ;;  %s3741_s6 = inlined_call_operand.vmem [shape: bf16[4,32,96], index: 6, kind: input, shape index: {}]   ;;  %s3742_s7 = inlined_call_operand.vmem [shape: f32[4,32,1], index: 7, kind: input, shape index: {}]   ;;  %s3743_s8 = inlined_call_operand.vmem [shape: bf16[4,32,96], index: 8, kind: input, shape index: {}]   ;;  %s3744_s9 = inlined_call_operand.vmem [shape: f32[4,32,1], index: 9, kind: input, shape index: {}]   ;;  %s3745_s10 = inlined_call_operand.vmem [shape: bf16[4,32,32], index: 10, kind: input, shape index: {}]   ;;  %s3746_s11 = inlined_call_operand.vmem [shape: f32[4,32,1], index: 11, kind: input, shape index: {}]   ;;  %s3747_s12 = inlined_call_operand.vmem [shape: bf16[4,32,32], index: 12, kind: input, shape index: {}]   ;;  %s3748_s13 = inlined_call_operand.vmem [shape: f32[4,32,1], index: 13, kind: input, shape index: {}]   ;;  %s3749_s14 = inlined_call_operand.vmem [shape: f32[4,1,1], index: 14, kind: input, shape index: {}]   ;;  %s3750_s15 = inlined_call_operand.vmem [shape: bf16[32,32], index: 15, kind: input, shape index: {}]   ;;  %s3751_s16 = inlined_call_operand.vmem [shape: f32[32,1], index: 16, kind: input, shape index: {}]   ;;  %s3752_s17 = inlined_call_operand.hbm [shape: f32[2,32,128], index: 17, kind: output, shape index: {0}]   ;;  %s3753_s18 = inlined_call_operand.hbm [shape: f32[2,32,128], index: 18, kind: output, shape index: {1}]  }
   0x1   :  { %3761 = sst [smem:[#allocation14_spill]] %s3735_s0 }
   0x2   :  { %3762 = sst [smem:[#allocation15_spill]] %s3736_s1 }
   0x3   :  { %3763 = sst [smem:[#allocation16_spill]] %s3737_s2 }
   0x4   :  { %3764 = sst [smem:[#allocation17_spill]] %s3738_s3 }
   0x5   :  { %3765 = sst [smem:[#allocation18_spill]] %s3739_s4 }
   0x6   :  { %3766 = sst [smem:[#allocation19_spill]] %s3740_s5 }
   0x7   :  { %3767 = sst [smem:[#allocation20_spill]] %s3741_s6 }
   0x8   :  { %3768 = sst [smem:[#allocation21_spill]] %s3742_s7 }
   0x9   :  { %3769 = sst [smem:[#allocation22_spill]] %s3743_s8 }
   0xa   :  { %3770 = sst [smem:[#allocation23_spill]] %s3744_s9 }
   0xb   :  { %24 = vsyncpa [#allocation3], 0 }
   0xc   :  { %26 = vsyncpa [#allocation3 + $0x1], 0 }
   0xd   :  { %27 = vsyncpa [#allocation5], 0 }
   0xe   :  { %29 = vsyncpa [#allocation5 + $0x1], 0  ;;  %s3142_s27 = smov 0   ;;  %s3144_s28 = smov 0  }
   0xf   :  { %s3146_s29 = smov 0   ;;  %s3148_s30 = smov 0  }
  0x10 LB: > { %3771 = sst [smem:[#allocation8_spill]] %s2983_s27  ;;  %s3163_s0 = sadd.s32 4294967295, %s2995_s30   ;;  %s2995_s30 = sphi %s3148_s30, %s3803_s30   ;;  %s2991_s29 = sphi %s3146_s29, %s3808_s29   ;;  %s2987_s28 = sphi %s3144_s28, %s3807_s28   ;;  %s2983_s27 = sphi %s3142_s27, %s3806_s27  }
  0x11   : > { %3772 = sst [smem:[#allocation9_spill]] %s2991_s29  ;;  %s2216_s19 = sadd.s32 4294967294, %s2995_s30  }
  0x12   : > { %3773 = sst [smem:[#allocation10_spill]] %s2995_s30  ;;  %s3167_s1 = sadd.s32 1, %s2995_s30  }
  0x13   : > { %3774 = sst [smem:[#allocation11_spill]] %s3167_s1  ;;  %s409_s20 = sadd.s32 1, %s2991_s29 }
  0x14   : > { %s406_s21 = ssub.s32 %s2995_s30, %s3167_s1  ;;  %p419_p0 = scmp.ne.s32.totalorder %s2991_s29, %s2987_s28 }
  0x15   : > { %p407_p1 = scmp.eq.s32.totalorder %s406_s21, 0  ;;  %p420_p2 = scmp.eq.s32.totalorder %s3163_s0, 1 }
  0x16   : > { %p425_p3 = scmp.ne.s32.totalorder %s2987_s28, %s2983_s27  ;;  %p426_p4 = scmp.eq.s32.totalorder %s2216_s19, 1 }
  0x17   : > { %s3178_s22 = scalar_select %p407_p1, %s2991_s29, %s409_s20  }
  0x18   : > { %p3180_p5 = por %p420_p2, %p419_p0  ;;  %p3184_p6 = por %p426_p4, %p425_p3 }
  0x19   : > { %3775 = sst [smem:[#allocation12_spill]] %s3178_s22  ;;  %p2219_p7 = scmp.ge.s32.totalorder %s2995_s30, 1 }
  0x1a   : > { %s3777_s23 = scalar_select %p3184_p6, 1, 0 }
  0x1b   : > { %p529_p8 = scmp.lt.s32.totalorder %s2995_s30, 3 }
  0x1c   : > { %3778 = sst [smem:[#allocation13_spill]] %s3777_s23 }
  0x1d   : > { %p530_p9 = pnand %p2219_p7, %p529_p8 }
  0x1e   : > { %s3779_s3 = sld [smem:[#allocation17_spill]] (!%p530_p9)  ;;  %s3780_s20 = sld [smem:[#allocation16_spill]] (!%p530_p9)  ;;  %v3033_v2 = vmov (!%p530_p9), 0   ;;  %v632_v5 = vlaneseq (!%p530_p9)  ;;  %vm708_vm0 = vcmask (!%p530_p9), 392192   ;;  %vm642_vm1 = vcmask (!%p530_p9), 7168  }
  0x1f   : > { %533 = sbr.rel (%p530_p9) target bundleno = 2101 (0x835), region = 88  ;;  %2728 = vset.pattern.permute.xlu1 (!%p530_p9), %v3033_v2  ;;  %2727 = vset.pattern.permute.xlu0 (!%p530_p9), %v3033_v2  ;;  %p591_p10 = scmp.lt.s32.totalorder (!%p530_p9), %s3163_s0, 1  ;;  %vm2226_vm2 = vmneg (!%p530_p9), %vm642_vm1  ;;  %vm648_vm4 = vcmask (!%p530_p9), 1039360   ;;  %vm665_vm5 = vcmask (!%p530_p9), 1031168   ;;  %vm659_vm6 = vcmask (!%p530_p9), 15360  }
  0x20   : > { %s3781_s23 = sld [smem:[#allocation14_spill]] (!%p530_p9)  ;;  %v633_v6 = vshrl.u32 (!%p530_p9), %v632_v5, 7  ;;  %s3782_s21 = sld [smem:[#allocation15_spill]] (!%p530_p9)  ;;  %vm3247_vm3 = vmpackc.low (!%p530_p9), %vm2226_vm2, %vm2226_vm2 }
  0x21   : > { %s3217_s29 = sand.u32 (!%p530_p9), 1, %s2987_s28   ;;  %s3783_s4 = sld [smem:[#allocation18_spill]] (!%p530_p9)  ;;  %vm3257_vm7 = vmpackc.low (!%p530_p9), %vm648_vm4, %vm648_vm4 }
  0x22   : > { %v3212_v10 = vsub.s32 (!%p530_p9), 0, %v633_v6  ;;  %s2220_s24 = sshll.u32 (!%p530_p9), %s3217_s29, 5  ;;  %s3784_s5 = sld [smem:[#allocation19_spill]] (!%p530_p9) }
  0x23   : > { %s3294_s19 = scalar_lea.vmem (!%p530_p9), [#allocation4], %s2220_s24  ;;  %s3312_s22 = smov (!%p530_p9), 0  }
  0x24   : > { %v605_v0 = vld [vmem:[%s3779_s3] sm:$0xff] (!%p530_p9)  ;;  %v606_v3 = vld [vmem:[%s3779_s3 + $0x8] sm:$0xff] (!%p530_p9) }
  0x25   : > { %v603_v1 = vld [vmem:[%s3780_s20] sm:$0xff] (!%p530_p9)  ;;  %621 = vperm.xlu1 (!%p530_p9), %2728, %v605_v0   ;;  %v604_v4 = vld [vmem:[%s3780_s20 + $0x8] sm:$0xff] (!%p530_p9) }
  0x26   : > { %609 = vperm.xlu0 %2727, %v603_v1   ;;  %s592_s25 = scalar_select %p591_p10, %s3163_s0, 1 }
  0x27   : > { %v2739_v24 = vld [vmem:[%s3783_s4] sm:$0xff]   ;;  %v2740_v47 = vld [vmem:[%s3783_s4 + $0x8] sm:$0xff]  }
  0x28   : > { %s2411_s26 = sshll.u32 %s592_s25, 4  ;;  %s598_s3 = scalar_lea.vmem %s3782_s21, %s592_s25  ;;  %2491 = vmatprep.mubr.msk.bf16.mxu0 %vm708_vm0, %v2739_v24  ;;  %v775_v25 = vld [vmem:[%s3784_s5 + $0x8] sm:$0xff]  ;;  %v774_v26 = vld [vmem:[%s3784_s5] sm:$0xff]  ;;  %v777_v27 = vld [vmem:[%s3784_s5 + $0x18] sm:$0xff] }
  0x29   : > { %626 = vperm.xlu1 %2728, %v606_v3   ;;  %s595_s27 = scalar_lea.vmem %s3781_s23, %s2411_s26  ;;  %v3214_v12 = vld [vmem:[%s598_s3] sm:$0x1]  ;;  %s3034_s3 = smov 127   ;;  %v776_v28 = vld [vmem:[%s3784_s5 + $0x10] sm:$0xff] }
  0x2a   : > { %614 = vperm.xlu0 %2727, %v604_v4   ;;  %v600_v7 = vld [vmem:[%s595_s27] sm:$0xff]  ;;  %v601_v13 = vld [vmem:[%s595_s27 + $0x8] sm:$0xff]  ;;  %v3222_v16 = vrot.slane %v3214_v12, %v3212_v10  ;;  %s3035_s27 = smov 1   ;;  %s3036_s23 = smov 126  }
  0x2b   : > { %s3037_s25 = smov 2   ;;  %s3290_s26 = scalar_lea.vmem [#allocation2], %s2220_s24 }
  0xa4   : > { %v622_v8 = vpop.permute.xlu1 %621 }
  0xa5   : > { %v610_v9 = vpop.permute.xlu0 %609 }
  0xa6   : > { %v617_v11 = vsub.f32 %v600_v7, %v610_v9 }
  0xa8   : > { %v629_v15 = vmul.f32 %v622_v8, %v617_v11  ;;  %v627_v18 = vpop.permute.xlu1 %626 }
  0xa9   : > { %v615_v14 = vpop.permute.xlu0 %614 }
  0xaa   : > { %v618_v17 = vsub.f32 %v601_v13, %v615_v14  ;;  %v637_v20 = vmul.f32 %v3222_v16, %v629_v15 }
  0xac   : > { %v630_v19 = vmul.f32 %v627_v18, %v618_v17 }
  0xae   : > { %v638_v21 = vmul.f32 %v3222_v16, %v630_v19 }
  0xb0   : > { %v2734_v22 = vpack.i.bf16 %v638_v21, %v637_v20  ;;  %v696_v23 = vpack.c.bf16 %v638_v21, %v637_v20  ;;  %v3296_v20 = vmov 0.0   ;;  %v3298_v21 = vmov 0.0  }
  0xb2   : > { %2735 = vrot.lane.b32.xlu1 %v2734_v22, %s3034_s3  ;;  %2730 = vrot.lane.b32.xlu0 %v2734_v22, %s3035_s27  ;;  %v3300_v22 = vmov 0.0  }
  0xb6   : > { %645 = vrot.lane.b32.xlu1 %v3222_v16, %s3034_s3  ;;  %639 = vrot.lane.b32.xlu0 %v3222_v16, %s3035_s27 }
  0xba   : > { %662 = vrot.lane.b32.xlu1 %v3222_v16, %s3036_s23  ;;  %656 = vrot.lane.b32.xlu0 %v3222_v16, %s3037_s25 }
  0xbe   : > { %785 = vperm.xlu1 %2728, %v775_v25   ;;  %780 = vperm.xlu0 %2727, %v774_v26  }
  0xc2   : > { %795 = vperm.xlu1 %2728, %v777_v27   ;;  %790 = vperm.xlu0 %2727, %v776_v28  }
 0x124   : > { %v2736_v29 = vpop.permute.xlu1 %2735  ;;  %v2731_v30 = vpop.permute.xlu0 %2730 }
 0x125   : > { %v2733_v31 = vunpack.i.h.bf16 %v2731_v30  ;;  %v2732_v32 = vunpack.i.l.bf16 %v2731_v30  ;;  %v2738_v37 = vunpack.i.h.bf16 %v2736_v29  ;;  %v2737_v38 = vunpack.i.l.bf16 %v2736_v29 }
 0x127   : > { %v2229_v34 = vpack.c.bf16 %v2733_v31, %v2732_v32  ;;  %v2232_v42 = vpack.c.bf16 %v2738_v37, %v2737_v38 }
 0x128   : > { %v646_v35 = vpop.permute.xlu1 %645  ;;  %v640_v36 = vpop.permute.xlu0 %639 }
 0x129   : > { %2485 = vmatprep.subr.msk.bf16.mxu0 %vm3247_vm3, %v2229_v34  ;;  %v643_v52 = vsel %vm642_vm1, 0.0, %v640_v36  ;;  %v649_v54 = vsel %vm648_vm4, %v646_v35, 0.0 }
 0x12a   : > { %2486 = vmatpush3.bf16.msk.msra.mxu0 %vm3247_vm3, %v2229_v34  ;;  %v644_v53 = vadd.f32 %v643_v52, %v3214_v12 }
 0x12b   : > { %2487 = vmatprep.subr.bf16.mxu0 %v696_v23 }
 0x12c   : > { %v663_v40 = vpop.permute.xlu1 %662  ;;  %v657_v41 = vpop.permute.xlu0 %656  ;;  %v650_v55 = vadd.f32 %v649_v54, %v644_v53 }
 0x12d   : > { %v666_v43 = vsel %vm665_vm5, %v663_v40, 0.0  ;;  %v660_v44 = vsel %vm659_vm6, 0.0, %v657_v41 }
 0x12e   : > { %2488 = vmatpush3.bf16.msra.mxu0 %v696_v23  ;;  %v661_v45 = vadd.f32 %v660_v44, %v3214_v12  ;;  %v652_v56 = vmax.f32 %v650_v55, 1.0  ;;  %vm651_vm9 = vcmp.gt.f32.partialorder %v650_v55, 0.0  ;;  %v3302_v23 = vmov 0.0  }
 0x12f   : > { %2489 = vmatprep.subr.msk.bf16.mxu0 %vm3257_vm7, %v2232_v42 }
 0x130   : > { %v667_v46 = vadd.f32 %v666_v43, %v661_v45 }
 0x132   : > { %2490 = vmatpush3.bf16.msk.msra.mxu0 %vm3257_vm7, %v2232_v42  ;;  %v669_v48 = vmax.f32 %v667_v46, 1.0  ;;  %vm668_vm8 = vcmp.gt.f32.partialorder %v667_v46, 0.0 }
 0x134   : > { %2741 = vrcp.f32 %v669_v48 }
 0x135   : > { %2492 = vmatmul.mubr.msk.bf16.vlgmr.msra.gmra.mrb[0].mxu0 %vm708_vm0, %v2740_v47  ;;  %2743 = vrcp.f32 %v652_v56 }
 0x13d   : > { %v781_v60 = vpop.permute.xlu0 %780  ;;  %v786_v61 = vpop.permute.xlu1 %785 }
 0x13e   : > { %v2742_v49 = vpop.eup %2741 }
 0x13f   : > { %v671_v50 = vmul.f32 3.0, %v2742_v49  ;;  %v2744_v57 = vpop.eup %2743 }
 0x140   : > { %v654_v58 = vmul.f32 3.0, %v2744_v57 }
 0x141   : > { %v3272_v51 = vsel %vm668_vm8, %v671_v50, 0.0  ;;  %v791_v3 = vpop.permute.xlu0 %790  ;;  %v796_v9 = vpop.permute.xlu1 %795 }
 0x142   : > { %v655_v59 = vsel %vm651_vm9, %v654_v58, 0.0 }
 0x143   : > { %v3278_v62 = vrot.slane %v655_v59, %v3212_v10 }
 0x208   : > { %v2493_v63 = vpop.f32.mrb[0].mxu0 }
 0x209   : > { %v772_v0 = vmul.f32 %v2493_v63, %v3278_v62  ;;  %v749_v1 = vpop.f32.mrb[1].mxu0 }
 0x20a   : > { %v770_v4 = vmul.f32 %v3278_v62, %v749_v1  ;;  %v2494_v5 = vpop.f32.mrb[2].mxu0 }
 0x20b   : > { %v800_v6 = vadd.f32 %v791_v3, %v772_v0  ;;  %v773_v7 = vmul.f32 %v2494_v5, %v3278_v62  ;;  %v752_v8 = vpop.f32.mrb[3].mxu0 }
 0x20c   : > { %v798_v11 = vadd.f32 %v781_v60, %v770_v4  ;;  %v771_v12 = vmul.f32 %v3278_v62, %v752_v8 }
 0x20d   : > { %v804_v13 = vmul.f32 %v800_v6, %v3222_v16   ;;  %v801_v14 = vadd.f32 %v796_v9, %v773_v7 }
 0x20e   : > { %v802_v15 = vmul.f32 %v798_v11, %v3222_v16   ;;  %v799_v17 = vadd.f32 %v786_v61, %v771_v12 }
 0x20f   : > { %v805_v18 = vmul.f32 %v801_v14, %v3222_v16  }
 0x210   : > { %v803_v19 = vmul.f32 %v799_v17, %v3222_v16  }
 0x211 LB: >> { %v2745_v24 = vpack.i.bf16 %v3023_v19, %v3027_v15  ;;  %s3038_s24 = smov 1   ;;  %v2750_v25 = vpack.i.bf16 %v3015_v18, %v3019_v13  ;;  %s3039_s21 = smov 127   ;;  %vm880_vm10 = vcmask 785408   ;;  %v3040_v28 = vmov 0   ;;  %vm2304_vm12 = vmneg %vm659_vm6  ;;  %s3031_s22 = sphi %s3312_s22, %s811_s22   ;;  %v3027_v15 = vphi %v802_v15, %v1848_v15   ;;  %v3023_v19 = vphi %v803_v19, %v1849_v19   ;;  %v3019_v13 = vphi %v804_v13, %v3799_v13   ;;  %v3015_v18 = vphi %v805_v18, %v1851_v18   ;;  %v3011_v23 = vphi %v3302_v23, %v3798_v23   ;;  %v3007_v22 = vphi %v3300_v22, %v3797_v22   ;;  %v3003_v21 = vphi %v3298_v21, %v3796_v21   ;;  %v2999_v20 = vphi %v3296_v20, %v3795_v20  }
 0x212   : >> { %s3346_s30 = sshll.u32 %s3031_s22, 5  ;;  %s3789_s6 = sld [smem:[#allocation20_spill]]  ;;  %2766 = vset.pattern.permute.xlu1 %v3040_v28  ;;  %2765 = vset.pattern.permute.xlu0 %v3040_v28  ;;  %v859_v54 = vpack.c.bf16 %v3023_v19, %v3027_v15  ;;  %v860_v57 = vpack.c.bf16 %v3015_v18, %v3019_v13  ;;  %vm1153_vm11 = vcmask 261120   ;;  %vm2306_vm13 = vmpackc.low %vm2304_vm12, %vm2304_vm12 }
 0x213   : >> { %2746 = vrot.lane.b32.xlu0 %v2745_v24, %s3038_s24  ;;  %2756 = vrot.lane.b32.xlu1 %v2745_v24, %s3039_s21  ;;  %s3790_s8 = sld [smem:[#allocation22_spill]]  ;;  %s3791_s9 = sld [smem:[#allocation23_spill]]  ;;  %vm3532_vm14 = vmpackc.low %vm665_vm5, %vm665_vm5 }
 0x214   : >> { %s3792_s7 = sld [smem:[#allocation21_spill]]  ;;  %s2236_s23 = sshll.u32 %s3031_s22, 1 }
 0x215   : >> { %s3448_s3 = scalar_lea.vmem %s3745_s10, %s3346_s30 }
 0x216   : >> { %v2791_v3 = vld [vmem:[%s3448_s3] sm:$0xff]  }
 0x217   : >> { %2751 = vrot.lane.b32.xlu0 %v2750_v25, %s3038_s24  ;;  %2761 = vrot.lane.b32.xlu1 %v2750_v25, %s3039_s21  ;;  %s3365_s24 = sshll.u32 %s3031_s22, 6  ;;  %s811_s22 = sadd.s32 1, %s3031_s22  }
 0x218   : >> { %s3352_s1 = scalar_lea.vmem %s3789_s6, %s3346_s30  ;;  %s3391_s6 = scalar_lea.vmem %s3746_s11, %s3365_s24 }
 0x219   : >> { %s3358_s4 = scalar_lea.vmem %s3790_s8, %s3346_s30  ;;  %v2787_v26 = vld [vmem:[%s3352_s1] sm:$0xff]   ;;  %s3371_s27 = scalar_lea.vmem %s3791_s9, %s3365_s24  ;;  %v1120_v40 = vld [vmem:[%s3391_s6 + $0x8] sm:$0xff]  ;;  %v1121_v41 = vld [vmem:[%s3391_s6 + $0x10] sm:$0xff] }
 0x21a   : >> { %v2788_v27 = vld [vmem:[%s3358_s4] sm:$0xff]   ;;  %2507 = vmatprep.mubr.msk.bf16.mxu0 %vm880_vm10, %v2787_v26  ;;  %v1051_v29 = vld [vmem:[%s3371_s27 + $0x8] sm:$0xff]  ;;  %v1052_v31 = vld [vmem:[%s3371_s27 + $0x10] sm:$0xff]  ;;  %s3381_s5 = scalar_lea.vmem %s3792_s7, %s3365_s24  ;;  %s3401_s8 = scalar_lea.vmem %s3749_s14, %s2236_s23 }
 0x21b   : >> { %2523 = vmatprep.mubr.msk.bf16.mxu1 %vm880_vm10, %v2788_v27  ;;  %v1050_v30 = vld [vmem:[%s3371_s27] sm:$0xff]  ;;  %1061 = vperm.xlu1 %2766, %v1051_v29   ;;  %v1053_v32 = vld [vmem:[%s3371_s27 + $0x18] sm:$0xff]  ;;  %v943_v35 = vld [vmem:[%s3381_s5 + $0x8] sm:$0xff]  ;;  %s3456_s9 = scalar_lea.vmem %s3747_s12, %s3346_s30  ;;  %s3041_s30 = smov 2  }
 0x21c   : >> { %1056 = vperm.xlu0 %2765, %v1050_v30   ;;  %v942_v34 = vld [vmem:[%s3381_s5] sm:$0xff]  ;;  %v944_v36 = vld [vmem:[%s3381_s5 + $0x10] sm:$0xff]  ;;  %v945_v37 = vld [vmem:[%s3381_s5 + $0x18] sm:$0xff]  ;;  %s3042_s7 = smov 126   ;;  %s1219_s25 = scalar_lea.vmem %s3748_s13, %s3365_s24 }
 0x21d   : >> { %v1119_v38 = vld [vmem:[%s3391_s6] sm:$0xff]  ;;  %v1122_v42 = vld [vmem:[%s3391_s6 + $0x18] sm:$0xff]  ;;  %v2789_v0 = vld [vmem:[%s3352_s1 + $0x8] sm:$0xff]   ;;  %p808_p11 = scmp.ge.s32.totalorder %s811_s22, 2  }
 0x21e   : >> { %v2295_v43 = vld [vmem:[%s3401_s8] ss:$0 sm:$0xff]  ;;  %v2790_v1 = vld [vmem:[%s3358_s4 + $0x8] sm:$0xff]   ;;  %s2426_s21 = sshll.u32 (%p808_p11), %s3163_s0, 9  ;;  %s2015_s23 = sshll.u32 (%p808_p11), %s3290_s26, 4  ;;  %s3645_s23 = int_to_ptr.vmem [resolvable:$true] %s2015_s23 }
 0x21f   : >> { %1066 = vperm.xlu1 %2766, %v1052_v31   ;;  %v2793_v4 = vld [vmem:[%s3456_s9] sm:$0xff]   ;;  %v2854_v33 = vld [vmem:[%s3750_s15 + $0x8] sm:$0xff] (%p808_p11)  }
 0x220   : >> { %1071 = vperm.xlu0 %2765, %v1053_v32  }
 0x223   : >> { %948 = vperm.xlu1 %2766, %v942_v34  }
 0x224   : >> { %953 = vperm.xlu0 %2765, %v943_v35  }
 0x227   : >> { %958 = vperm.xlu1 %2766, %v944_v36  }
 0x228   : >> { %963 = vperm.xlu0 %2765, %v945_v37  }
 0x22b   : >> { %1125 = vperm.xlu1 %2766, %v1119_v38  }
 0x22c   : >> { %1130 = vperm.xlu0 %2765, %v1120_v40  }
 0x22f   : >> { %1135 = vperm.xlu1 %2766, %v1121_v41  }
 0x230   : >> { %1140 = vperm.xlu0 %2765, %v1122_v42  }
 0x233   : >> { %1321 = vperm.xlu1 %2766, %v2295_v43  }
 0x285   : >> { %v2747_v44 = vpop.permute.xlu0 %2746  ;;  %v2757_v52 = vpop.permute.xlu1 %2756 }
 0x286   : >> { %v2749_v45 = vunpack.i.h.bf16 %v2747_v44  ;;  %v2748_v46 = vunpack.i.l.bf16 %v2747_v44  ;;  %v2759_v55 = vunpack.i.h.bf16 %v2757_v52  ;;  %v2758_v56 = vunpack.i.l.bf16 %v2757_v52 }
 0x288   : >> { %v2244_v47 = vpack.c.bf16 %v2749_v45, %v2748_v46  ;;  %v2252_v59 = vpack.c.bf16 %v2759_v55, %v2758_v56 }
 0x289   : >> { %v2752_v48 = vpop.permute.xlu0 %2751  ;;  %v2762_v58 = vpop.permute.xlu1 %2761 }
 0x28a   : >> { %v2754_v49 = vunpack.i.h.bf16 %v2752_v48  ;;  %v2753_v50 = vunpack.i.l.bf16 %v2752_v48  ;;  %2495 = vmatprep.subr.msk.bf16.mxu0 %vm3247_vm3, %v2244_v47  ;;  %2511 = vmatprep.subr.msk.bf16.mxu1 %vm3247_vm3, %v2244_v47  ;;  %v2764_v60 = vunpack.i.h.bf16 %v2762_v58  ;;  %v2763_v61 = vunpack.i.l.bf16 %v2762_v58 }
 0x28b   : >> { %2496 = vmatpush3.bf16.msk.msra.mxu0 %vm3247_vm3, %v2244_v47  ;;  %2512 = vmatpush3.bf16.msk.msra.mxu1 %vm3247_vm3, %v2244_v47 }
 0x28c   : >> { %v2249_v53 = vpack.c.bf16 %v2754_v49, %v2753_v50  ;;  %v2255_v63 = vpack.c.bf16 %v2764_v60, %v2763_v61 }
 0x28e   : >> { %2497 = vmatprep.subr.msk.bf16.mxu0 %vm3247_vm3, %v2249_v53  ;;  %2513 = vmatprep.subr.msk.bf16.mxu1 %vm3247_vm3, %v2249_v53 }
 0x28f   : >> { %2498 = vmatpush3.bf16.msk.msra.mxu0 %vm3247_vm3, %v2249_v53  ;;  %2514 = vmatpush3.bf16.msk.msra.mxu1 %vm3247_vm3, %v2249_v53 }
 0x290   : >> { %2499 = vmatprep.subr.bf16.mxu0 %v859_v54  ;;  %2515 = vmatprep.subr.bf16.mxu1 %v859_v54 }
 0x293   : >> { %2500 = vmatpush3.bf16.msra.mxu0 %v859_v54  ;;  %2516 = vmatpush3.bf16.msra.mxu1 %v859_v54 }
 0x294   : >> { %2501 = vmatprep.subr.bf16.mxu0 %v860_v57  ;;  %2517 = vmatprep.subr.bf16.mxu1 %v860_v57 }
 0x297   : >> { %2502 = vmatpush3.bf16.msra.mxu0 %v860_v57  ;;  %2518 = vmatpush3.bf16.msra.mxu1 %v860_v57 }
 0x298   : >> { %2503 = vmatprep.subr.msk.bf16.mxu0 %vm3257_vm7, %v2252_v59  ;;  %2519 = vmatprep.subr.msk.bf16.mxu1 %vm3257_vm7, %v2252_v59 }
 0x29a   : >> { %v1062_v5 = vpop.permute.xlu1 %1061 }
 0x29b   : >> { %2504 = vmatpush3.bf16.msk.msra.mxu0 %vm3257_vm7, %v2252_v59  ;;  %2520 = vmatpush3.bf16.msk.msra.mxu1 %vm3257_vm7, %v2252_v59  ;;  %v1057_v6 = vpop.permute.xlu0 %1056 }
 0x29c   : >> { %2505 = vmatprep.subr.msk.bf16.mxu0 %vm3257_vm7, %v2255_v63  ;;  %2521 = vmatprep.subr.msk.bf16.mxu1 %vm3257_vm7, %v2255_v63 }
 0x29e   : >> { %v1067_v7 = vpop.permute.xlu1 %1066 }
 0x29f   : >> { %2506 = vmatpush3.bf16.msk.msra.mxu0 %vm3257_vm7, %v2255_v63  ;;  %2522 = vmatpush3.bf16.msk.msra.mxu1 %vm3257_vm7, %v2255_v63  ;;  %v1072_v8 = vpop.permute.xlu0 %1071 }
 0x2a2   : >> { %2508 = vmatmul.mubr.msk.bf16.vlgmr.msra.gmra.mrb[0].mxu0 %vm880_vm10, %v2789_v0  ;;  %2524 = vmatmul.mubr.msk.bf16.vlgmr.msra.gmra.mrb[0].mxu1 %vm880_vm10, %v2790_v1  ;;  %v949_v34 = vpop.permute.xlu1 %948 }
 0x2a3   : >> { %2531 = vmatprep.mubr.msk.bf16.mxu0 %vm1153_vm11, %v2791_v3  ;;  %2539 = vmatprep.mubr.msk.bf16.mxu1 %vm1153_vm11, %v2793_v4  ;;  %v954_v42 = vpop.permute.xlu0 %953 }
 0x2a6   : >> { %v959_v45 = vpop.permute.xlu1 %958 }
 0x2a7   : >> { %v964_v50 = vpop.permute.xlu0 %963 }
 0x375   : >> { %v2509_v9 = vpop.f32.mrb[0].mxu0  ;;  %v2525_v11 = vpop.f32.mrb[0].mxu1 }
 0x376   : >> { %v1047_v12 = vmul.f32 %v2525_v11, %v3278_v62  ;;  %v921_v14 = vpop.f32.mrb[1].mxu0  ;;  %v1030_v17 = vpop.f32.mrb[1].mxu1  ;;  %v938_v40 = vmul.f32 %v2509_v9, %v3278_v62 }
 0x377   : >> { %v1045_v24 = vmul.f32 %v1030_v17, %v3278_v62  ;;  %v2510_v25 = vpop.f32.mrb[2].mxu0  ;;  %v2526_v26 = vpop.f32.mrb[2].mxu1  ;;  %v936_v43 = vmul.f32 %v921_v14, %v3278_v62 }
 0x378   : >> { %v1076_v27 = vadd.f32 %v1067_v7, %v1047_v12  ;;  %v1048_v28 = vmul.f32 %v2526_v26, %v3278_v62  ;;  %v924_v29 = vpop.f32.mrb[3].mxu0  ;;  %v1033_v30 = vpop.f32.mrb[3].mxu1  ;;  %v968_v46 = vadd.f32 %v959_v45, %v938_v40  ;;  %v939_v47 = vmul.f32 %v2510_v25, %v3278_v62 }
 0x379   : >> { %v1074_v31 = vadd.f32 %v1057_v6, %v1045_v24  ;;  %v1046_v32 = vmul.f32 %v1033_v30, %v3278_v62  ;;  %v966_v48 = vadd.f32 %v949_v34, %v936_v43  ;;  %v937_v49 = vmul.f32 %v924_v29, %v3278_v62  ;;  %v2794_v29 = vld [vmem:[%s3456_s9 + $0x8] sm:$0xff]   ;;  %v1126_v30 = vpop.permute.xlu1 %1125 }
 0x37a   : >> { %v2283_v35 = vmul.f32 -1.442695, %v1076_v27  ;;  %v1077_v36 = vadd.f32 %v1072_v8, %v1048_v28  ;;  %v972_v52 = vmul.f32 %v968_v46, %v3222_v16  ;;  %v969_v53 = vadd.f32 %v964_v50, %v939_v47  ;;  %v2792_v28 = vld [vmem:[%s3448_s3 + $0x8] sm:$0xff]  }
 0x37b   : >> { %v2281_v37 = vmul.f32 -1.442695, %v1074_v31  ;;  %v1075_v38 = vadd.f32 %v1062_v5, %v1046_v32  ;;  %v970_v55 = vmul.f32 %v966_v48, %v3222_v16  ;;  %v967_v56 = vadd.f32 %v954_v42, %v937_v49  ;;  %v1131_v31 = vpop.permute.xlu0 %1130 }
 0x37c   : >> { %2803 = vpow2.f32 %v2283_v35  ;;  %v2284_v41 = vmul.f32 -1.442695, %v1077_v36  ;;  %v973_v59 = vmul.f32 %v969_v53, %v3222_v16 }
 0x37d   : >> { %2805 = vpow2.f32 %v2281_v37  ;;  %v2282_v44 = vmul.f32 -1.442695, %v1075_v38  ;;  %v971_v63 = vmul.f32 %v967_v56, %v3222_v16  ;;  %v1136_v32 = vpop.permute.xlu1 %1135 }
 0x37e   : >> { %2807 = vpow2.f32 %v2284_v41 }
 0x37f   : >> { %2809 = vpow2.f32 %v2282_v44  ;;  %v1141_v37 = vpop.permute.xlu0 %1140 }
 0x380   : >> { %2811 = vtanh.f32 %v972_v52 }
 0x381   : >> { %v1322_v44 = vpop.permute.xlu1 %1321 }
 0x386   : >> { %v2804_v54 = vpop.eup %2803 }
 0x387   : >> { %v1096_v57 = vadd.f32 1.0, %v2804_v54  ;;  %v2806_v58 = vpop.eup %2805 }
 0x388   : >> { %v1094_v60 = vadd.f32 1.0, %v2806_v58  ;;  %v2808_v61 = vpop.eup %2807 }
 0x389   : >> { %2813 = vrcp.f32 %v1096_v57  ;;  %v1097_v0 = vadd.f32 1.0, %v2808_v61  ;;  %v2810_v1 = vpop.eup %2809  ;;  %v2795_v61 = vld [vmem:[%s3352_s1 + $0x10] sm:$0xff]  }
 0x38a   : >> { %2815 = vtanh.f32 %v970_v55  ;;  %v1095_v3 = vadd.f32 1.0, %v2810_v1  ;;  %v2812_v4 = vpop.eup %2811  ;;  %v2327_v1 = vld [vmem:[%s3381_s5 + $0x38] sm:$0xff] }
 0x38b   : >> { %2817 = vrcp.f32 %v1094_v60  ;;  %v2325_v60 = vld [vmem:[%s3381_s5 + $0x28] sm:$0xff] }
 0x38c   : >> { %2819 = vtanh.f32 %v973_v59 }
 0x38d   : >> { %2821 = vrcp.f32 %v1097_v0  ;;  %v2324_v0 = vld [vmem:[%s3381_s5 + $0x20] sm:$0xff] }
 0x38e   : >> { %2823 = vtanh.f32 %v971_v63  ;;  %v2796_v63 = vld [vmem:[%s3358_s4 + $0x10] sm:$0xff]  }
 0x38f   : >> { %2825 = vrcp.f32 %v1095_v3  ;;  %v2326_v3 = vld [vmem:[%s3381_s5 + $0x30] sm:$0xff]  ;;  %s3643_s5 = scalar_lea.hbm (%p808_p11), %s3752_s17, %s2426_s21 }
 0x393   : >> { %v2814_v5 = vpop.eup %2813 }
 0x394   : >> { %v2816_v6 = vpop.eup %2815  ;;  %v1108_v7 = vmul.f32 %v2814_v5, %v2812_v4 }
 0x395   : >> { %v2818_v8 = vpop.eup %2817 }
 0x396   : >> { %v2820_v9 = vpop.eup %2819  ;;  %v1106_v11 = vmul.f32 %v2818_v8, %v2816_v6  ;;  %v1221_v6 = vld [vmem:[%s1219_s25 + $0x8] sm:$0xff]  ;;  %v1220_v8 = vld [vmem:[%s1219_s25] sm:$0xff] }
 0x397   : >> { %v2822_v12 = vpop.eup %2821 }
 0x398   : >> { %v2824_v14 = vpop.eup %2823  ;;  %v1109_v17 = vmul.f32 %v2822_v12, %v2820_v9  ;;  %v1222_v12 = vld [vmem:[%s1219_s25 + $0x10] sm:$0xff] }
 0x399   : >> { %v2826_v24 = vpop.eup %2825 }
 0x39a   : >> { %v1107_v25 = vmul.f32 %v2826_v24, %v2824_v14  ;;  %v1111_v26 = vpack.c.bf16 %v1109_v17, %v1108_v7  ;;  %v2373_v14 = vld [vmem:[%s3391_s6 + $0x28] sm:$0xff]  ;;  %v2372_v17 = vld [vmem:[%s3391_s6 + $0x20] sm:$0xff]  ;;  %v2375_v24 = vld [vmem:[%s3391_s6 + $0x38] sm:$0xff] }
 0x39c   : >> { %v1110_v27 = vpack.c.bf16 %v1107_v25, %v1106_v11  ;;  %v1223_v11 = vld [vmem:[%s1219_s25 + $0x18] sm:$0xff]  ;;  %v2374_v25 = vld [vmem:[%s3391_s6 + $0x30] sm:$0xff]  ;;  %s1997_s6 = scalar_lea.sflag (%p808_p11), [#allocation3], %s3217_s29 }
 0x39e   : >> { %2527 = vmatprep.subr.bf16.mxu0 %v1110_v27  ;;  %2535 = vmatprep.subr.bf16.mxu1 %v1110_v27 }
 0x39f   : >> { %2528 = vmatpush3.bf16.msra.mxu0 %v1110_v27  ;;  %2536 = vmatpush3.bf16.msra.mxu1 %v1110_v27  ;;  %v2388_v27 = vld [vmem:[%s1219_s25 + $0x20] sm:$0xff] }
 0x3a0   : >> { %2529 = vmatprep.subr.bf16.mxu0 %v1111_v26  ;;  %2537 = vmatprep.subr.bf16.mxu1 %v1111_v26 }
 0x3a3   : >> { %2530 = vmatpush3.bf16.msra.mxu0 %v1111_v26  ;;  %2538 = vmatpush3.bf16.msra.mxu1 %v1111_v26  ;;  %v2389_v26 = vld [vmem:[%s1219_s25 + $0x28] sm:$0xff] }
 0x3a6   : >> { %2532 = vmatmul.mubr.msk.bf16.vlgmr.msra.gmra.mrb[4].mxu0 %vm1153_vm11, %v2792_v28  ;;  %2540 = vmatmul.mubr.msk.bf16.vlgmr.msra.gmra.mrb[4].mxu1 %vm1153_vm11, %v2794_v29  ;;  %v2391_v28 = vld [vmem:[%s1219_s25 + $0x38] sm:$0xff]  ;;  %v2390_v29 = vld [vmem:[%s1219_s25 + $0x30] sm:$0xff] }
 0x3a7   : >> { %2555 = vmatprep.mubr.msk.bf16.mxu0 %vm880_vm10, %v2795_v61  ;;  %2571 = vmatprep.mubr.msk.bf16.mxu1 %vm880_vm10, %v2796_v63 }
 0x479   : >> { %v2533_v34 = vpop.f32.mrb[4].mxu0  ;;  %v3512_v4 = vpop.f32.mrb[4].mxu1 }
 0x47a   : >> { %v1203_v35 = vadd.f32 %v2533_v34, %v1136_v32  ;;  %v1194_v36 = vpop.f32.mrb[5].mxu0  ;;  %v3514_v5 = vpop.f32.mrb[5].mxu1 }
 0x47b   : >> { %v1195_v38 = vadd.f32 %v1194_v36, %v1126_v30  ;;  %v2534_v40 = vpop.f32.mrb[6].mxu0  ;;  %v3516_v7 = vpop.f32.mrb[6].mxu1  ;;  %v2398_v30 = vld [vmem:[%s3401_s8 + $0x1] ss:$0 sm:$0xff]  ;;  %s2865_s8 = scalar_lea.vmem (%p808_p11), %s3645_s23, 512 }
 0x47c   : >> { %v1211_v41 = vmul.f32 %v1203_v35, %v3222_v16  ;;  %v1206_v42 = vadd.f32 %v2534_v40, %v1141_v37  ;;  %v1197_v43 = vpop.f32.mrb[7].mxu0  ;;  %v3518_v9 = vpop.f32.mrb[7].mxu1  ;;  %p2866_p12 = scmp.ne.s32.totalorder (%p808_p11), %s3645_s23, %s2865_s8 }
 0x47d   : >> { %v1209_v45 = vmul.f32 %v1195_v38, %v3222_v16  ;;  %v1198_v46 = vadd.f32 %v1197_v43, %v1131_v31 }
 0x47e   : >> { %v1326_v47 = vmul.f32 %v1322_v44, %v1211_v41  ;;  %v1212_v48 = vmul.f32 %v1206_v42, %v3222_v16  ;;  %p2867_p13 = pnand (%p808_p11), %p2866_p12, %p3180_p5 }
 0x47f   : >> { %v1324_v49 = vmul.f32 %v1322_v44, %v1209_v45  ;;  %v1210_v50 = vmul.f32 %v1198_v46, %v3222_v16 }
 0x480   : >> { %v1327_v52 = vmul.f32 %v1322_v44, %v1212_v48  ;;  %v3481_v54 = vadd.f32 %v3019_v13, %v1326_v47  ;;  %v2357_v13 = vld [vmem:[%s3371_s27 + $0x28] sm:$0xff]  ;;  %p2868_p0 = pneg (%p808_p11), %p2867_p13 }
 0x481   : >> { %v1325_v53 = vmul.f32 %v1322_v44, %v1210_v50  ;;  %v3487_v56 = vadd.f32 %v3027_v15, %v1324_v49  ;;  %v2356_v15 = vld [vmem:[%s3371_s27 + $0x20] sm:$0xff] }
 0x482   : >> { %v3484_v55 = vadd.f32 %v3015_v18, %v1327_v52  ;;  %v2359_v18 = vld [vmem:[%s3371_s27 + $0x38] sm:$0xff] }
 0x483   : >> { %v3490_v57 = vadd.f32 %v3023_v19, %v1325_v53  ;;  %v2358_v19 = vld [vmem:[%s3371_s27 + $0x30] sm:$0xff]  ;;  %v2797_v53 = vld [vmem:[%s3352_s1 + $0x18] sm:$0xff]  }
 0x484   : >> { %v2772_v58 = vpack.i.bf16 %v3484_v55, %v3481_v54  ;;  %v1376_v45 = vpack.c.bf16 %v3484_v55, %v3481_v54 }
 0x485   : >> { %v2767_v59 = vpack.i.bf16 %v3490_v57, %v3487_v56  ;;  %v1375_v41 = vpack.c.bf16 %v3490_v57, %v3487_v56 }
 0x486   : >> { %2773 = vrot.lane.b32.xlu1 %v2772_v58, %s3041_s30 }
 0x487   : >> { %2768 = vrot.lane.b32.xlu0 %v2767_v59, %s3041_s30 }
 0x48a   : >> { %2783 = vrot.lane.b32.xlu1 %v2772_v58, %s3042_s7  ;;  %v2798_v58 = vld [vmem:[%s3358_s4 + $0x18] sm:$0xff]  }
 0x48b   : >> { %2778 = vrot.lane.b32.xlu0 %v2767_v59, %s3042_s7  ;;  %v2799_v59 = vld [vmem:[%s3448_s3 + $0x10] sm:$0xff]  }
 0x48e   : >> { %1582 = vperm.xlu1 %2766, %v2357_v13   ;;  %v2800_v13 = vld [vmem:[%s3456_s9 + $0x10] sm:$0xff]  }
 0x48f   : >> { %1577 = vperm.xlu0 %2765, %v2356_v15  }
 0x492   : >> { %1592 = vperm.xlu1 %2766, %v2359_v18  }
 0x493   : >> { %1587 = vperm.xlu0 %2765, %v2358_v19   ;;  %v1455_v19 = vrot.slane %v3272_v51, %v3212_v10  ;;  %v1862_v10 = vld [vmem:[%s3751_s16] sm:$0xff] (%p808_p11) }
 0x496   : >> { %1474 = vperm.xlu1 %2766, %v2325_v60  }
 0x497   : >> { %1469 = vperm.xlu0 %2765, %v2324_v0  }
 0x49a   : >> { %1484 = vperm.xlu1 %2766, %v2327_v1  }
 0x49b   : >> { %1479 = vperm.xlu0 %2765, %v2326_v3  }
 0x49e   : >> { %1231 = vperm.xlu1 %2766, %v1221_v6  }
 0x49f   : >> { %1226 = vperm.xlu0 %2765, %v1220_v8  }
 0x4a2   : >> { %1241 = vperm.xlu1 %2766, %v1223_v11  }
 0x4a3   : >> { %1236 = vperm.xlu0 %2765, %v1222_v12  }
 0x4a6   : >> { %1651 = vperm.xlu1 %2766, %v2373_v14  }
 0x4a7   : >> { %1646 = vperm.xlu0 %2765, %v2372_v17  }
 0x4aa   : >> { %1661 = vperm.xlu1 %2766, %v2375_v24  }
 0x4ab   : >> { %1656 = vperm.xlu0 %2765, %v2374_v25  }
 0x4ae   : >> { %1751 = vperm.xlu1 %2766, %v2389_v26  }
 0x4af   : >> { %1746 = vperm.xlu0 %2765, %v2388_v27  }
 0x4b2   : >> { %1761 = vperm.xlu1 %2766, %v2391_v28  }
 0x4b3   : >> { %1756 = vperm.xlu0 %2765, %v2390_v29  }
 0x4b6   : > { %2852 = vset.pattern.permute.xlu1 (%p808_p11), %v3033_v2 }
 0x4b7   : >> { %1841 = vperm.xlu0 %2765, %v2398_v30  }
 0x4bb   : > { %2851 = vset.pattern.permute.xlu0 (%p808_p11), %v3033_v2  ;;  %v1865_v2 = vld [vmem:[%s3751_s16 + $0x18] sm:$0xff] (%p808_p11) }
 0x4bc   : > { %1868 = vperm.xlu0 (%p808_p11), %2851, %v1862_v10  }
 0x4f8   : >> { %v2774_v31 = vpop.permute.xlu1 %2773 }
 0x4f9   : >> { %v2769_v32 = vpop.permute.xlu0 %2768  ;;  %v2776_v34 = vunpack.i.h.bf16 %v2774_v31  ;;  %v2775_v35 = vunpack.i.l.bf16 %v2774_v31 }
 0x4fa   : >> { %v2771_v36 = vunpack.i.h.bf16 %v2769_v32  ;;  %v2770_v37 = vunpack.i.l.bf16 %v2769_v32 }
 0x4fb   : >> { %v2312_v40 = vpack.c.bf16 %v2776_v34, %v2775_v35 }
 0x4fc   : >> { %v2307_v38 = vpack.c.bf16 %v2771_v36, %v2770_v37  ;;  %v2784_v46 = vpop.permute.xlu1 %2783 }
 0x4fd   : >> { %v2779_v42 = vpop.permute.xlu0 %2778  ;;  %v2786_v48 = vunpack.i.h.bf16 %v2784_v46  ;;  %v2785_v49 = vunpack.i.l.bf16 %v2784_v46 }
 0x4fe   : >> { %2543 = vmatprep.subr.msk.bf16.mxu0 %vm2306_vm13, %v2307_v38  ;;  %2559 = vmatprep.subr.msk.bf16.mxu1 %vm2306_vm13, %v2307_v38  ;;  %v2781_v43 = vunpack.i.h.bf16 %v2779_v42  ;;  %v2780_v44 = vunpack.i.l.bf16 %v2779_v42 }
 0x4ff   : >> { %2544 = vmatpush3.bf16.msk.msra.mxu0 %vm2306_vm13, %v2307_v38  ;;  %2560 = vmatpush3.bf16.msk.msra.mxu1 %vm2306_vm13, %v2307_v38  ;;  %v2318_v52 = vpack.c.bf16 %v2786_v48, %v2785_v49 }
 0x500   : >> { %2545 = vmatprep.subr.msk.bf16.mxu0 %vm2306_vm13, %v2312_v40  ;;  %2561 = vmatprep.subr.msk.bf16.mxu1 %vm2306_vm13, %v2312_v40  ;;  %v2315_v50 = vpack.c.bf16 %v2781_v43, %v2780_v44 }
 0x503   : >> { %2546 = vmatpush3.bf16.msk.msra.mxu0 %vm2306_vm13, %v2312_v40  ;;  %2562 = vmatpush3.bf16.msk.msra.mxu1 %vm2306_vm13, %v2312_v40 }
 0x504   : >> { %2547 = vmatprep.subr.bf16.mxu0 %v1375_v41  ;;  %2563 = vmatprep.subr.bf16.mxu1 %v1375_v41 }
 0x507   : >> { %2548 = vmatpush3.bf16.msra.mxu0 %v1375_v41  ;;  %2564 = vmatpush3.bf16.msra.mxu1 %v1375_v41 }
 0x508   : >> { %2549 = vmatprep.subr.bf16.mxu0 %v1376_v45  ;;  %2565 = vmatprep.subr.bf16.mxu1 %v1376_v45 }
 0x50b   : >> { %2550 = vmatpush3.bf16.msra.mxu0 %v1376_v45  ;;  %2566 = vmatpush3.bf16.msra.mxu1 %v1376_v45 }
 0x50c   : >> { %2551 = vmatprep.subr.msk.bf16.mxu0 %vm3532_vm14, %v2315_v50  ;;  %2567 = vmatprep.subr.msk.bf16.mxu1 %vm3532_vm14, %v2315_v50 }
 0x50d   : >> { %v1583_v15 = vpop.permute.xlu1 %1582 }
 0x50e   : >> { %v1578_v18 = vpop.permute.xlu0 %1577 }
 0x50f   : >> { %2552 = vmatpush3.bf16.msk.msra.mxu0 %vm3532_vm14, %v2315_v50  ;;  %2568 = vmatpush3.bf16.msk.msra.mxu1 %vm3532_vm14, %v2315_v50 }
 0x510   : >> { %2553 = vmatprep.subr.msk.bf16.mxu0 %vm3532_vm14, %v2318_v52  ;;  %2569 = vmatprep.subr.msk.bf16.mxu1 %vm3532_vm14, %v2318_v52 }
 0x511   : >> { %v1593_v60 = vpop.permute.xlu1 %1592 }
 0x512   : >> { %v1588_v61 = vpop.permute.xlu0 %1587 }
 0x513   : >> { %2554 = vmatpush3.bf16.msk.msra.mxu0 %vm3532_vm14, %v2318_v52  ;;  %2570 = vmatpush3.bf16.msk.msra.mxu1 %vm3532_vm14, %v2318_v52 }
 0x515   : >> { %v1475_v36 = vpop.permute.xlu1 %1474 }
 0x516   : >> { %2556 = vmatmul.mubr.msk.bf16.vlgmr.msra.gmra.mrb[8].mxu0 %vm880_vm10, %v2797_v53  ;;  %2572 = vmatmul.mubr.msk.bf16.vlgmr.msra.gmra.mrb[8].mxu1 %vm880_vm10, %v2798_v58  ;;  %v1470_v28 = vpop.permute.xlu0 %1469 }
 0x517   : >> { %2579 = vmatprep.mubr.msk.bf16.mxu0 %vm1153_vm11, %v2799_v59  ;;  %2587 = vmatprep.mubr.msk.bf16.mxu1 %vm1153_vm11, %v2800_v13 }
 0x519   : >> { %v1485_v45 = vpop.permute.xlu1 %1484 }
 0x51a   : >> { %v1480_v40 = vpop.permute.xlu0 %1479 }
 0x5e9   : >> { %v2557_v63 = vpop.f32.mrb[8].mxu0  ;;  %v2573_v0 = vpop.f32.mrb[8].mxu1 }
 0x5ea   : >> { %v1568_v1 = vmul.f32 %v2573_v0, %v1455_v19  ;;  %v1436_v3 = vpop.f32.mrb[9].mxu0  ;;  %v1551_v6 = vpop.f32.mrb[9].mxu1  ;;  %v1459_v34 = vmul.f32 %v2557_v63, %v1455_v19 }
 0x5eb   : >> { %v1566_v8 = vmul.f32 %v1551_v6, %v1455_v19  ;;  %v2558_v11 = vpop.f32.mrb[10].mxu0  ;;  %v2574_v12 = vpop.f32.mrb[10].mxu1  ;;  %v1457_v37 = vmul.f32 %v1455_v19, %v1436_v3 }
 0x5ec   : >> { %v1597_v14 = vadd.f32 %v1588_v61, %v1568_v1  ;;  %v1569_v17 = vmul.f32 %v2574_v12, %v1455_v19  ;;  %v1439_v24 = vpop.f32.mrb[11].mxu0  ;;  %v1554_v25 = vpop.f32.mrb[11].mxu1  ;;  %v1489_v41 = vadd.f32 %v1480_v40, %v1459_v34  ;;  %v1460_v42 = vmul.f32 %v2558_v11, %v1455_v19 }
 0x5ed   : >> { %v1595_v26 = vadd.f32 %v1578_v18, %v1566_v8  ;;  %v1567_v27 = vmul.f32 %v1554_v25, %v1455_v19  ;;  %v1487_v43 = vadd.f32 %v1470_v28, %v1457_v37  ;;  %v1458_v44 = vmul.f32 %v1455_v19, %v1439_v24  ;;  %v2802_v28 = vld [vmem:[%s3456_s9 + $0x18] sm:$0xff]   ;;  %s3043_s9 = smov (%p808_p11), [#allocation2]  }
 0x5ee   : >> { %v2362_v29 = vmul.f32 -1.442695, %v1597_v14  ;;  %v1598_v30 = vadd.f32 %v1593_v60, %v1569_v17  ;;  %v1493_v46 = vmul.f32 %v1489_v41, %v3222_v16  ;;  %v1490_v47 = vadd.f32 %v1485_v45, %v1460_v42  ;;  %s2869_s22 = sshll.u32 (%p808_p11), %s3043_s9, 4  ;;  %s2870_s22 = int_to_ptr.vmem [resolvable:$false] %s2869_s22 }
 0x5ef   : >> { %v2360_v31 = vmul.f32 -1.442695, %v1595_v26  ;;  %v1596_v32 = vadd.f32 %v1583_v15, %v1567_v27  ;;  %v1491_v49 = vmul.f32 %v1487_v43, %v3222_v16  ;;  %v1488_v50 = vadd.f32 %v1475_v36, %v1458_v44  ;;  %v2801_v27 = vld [vmem:[%s3448_s3 + $0x18] sm:$0xff]   ;;  %s2871_s1 = scalar_lea.vmem (%p808_p11), %s2870_s22, 1024  ;;  %p2872_p1 = scmp.lt.s32.totalorder (%p808_p11), %s3645_s23, %s2870_s22 }
 0x5f0   : >> { %2827 = vpow2.f32 %v2362_v29  ;;  %v2363_v35 = vmul.f32 -1.442695, %v1598_v30  ;;  %v1494_v58 = vmul.f32 %v1490_v47, %v3222_v16  ;;  %v1227_v29 = vpop.permute.xlu0 %1226  ;;  %v1232_v30 = vpop.permute.xlu1 %1231  ;;  %p2873_p2 = scmp.lt.s32.totalorder (%p808_p11), %s2871_s1, %s2865_s8 }
 0x5f1   : >> { %2829 = vpow2.f32 %v2360_v31  ;;  %v2361_v38 = vmul.f32 -1.442695, %v1596_v32  ;;  %v1492_v15 = vmul.f32 %v1488_v50, %v3222_v16  ;;  %v1298_v40 = vadd.f32 %v3518_v9, %v1232_v30 }
 0x5f2   : >> { %2831 = vpow2.f32 %v2363_v35  ;;  %v1295_v41 = vadd.f32 %v3514_v5, %v1227_v29  ;;  %p2874_p3 = por (%p808_p11), %p2873_p2, %p2872_p1 }
 0x5f3   : >> { %2833 = vpow2.f32 %v2361_v38  ;;  %v1310_v45 = vmul.f32 %v1298_v40, %v3222_v16 }
 0x5f4   : >> { %2835 = vtanh.f32 %v1493_v46  ;;  %v1237_v31 = vpop.permute.xlu0 %1236  ;;  %v1242_v32 = vpop.permute.xlu1 %1241  ;;  %v1309_v46 = vmul.f32 %v1295_v41, %v3222_v16  ;;  %p2875_p4 = pnand (%p808_p11), %p2874_p3, %p2868_p0 }
 0x5f5   : >> { %v1306_v43 = vadd.f32 %v3516_v7, %v1242_v32  ;;  %v1303_v44 = vadd.f32 %v3512_v4, %v1237_v31  ;;  %v1333_v9 = vadd.f32 %v3007_v22, %v1310_v45 }
 0x5f6   : >> { %v1332_v5 = vadd.f32 %v3011_v23, %v1309_v46 }
 0x5f7   : >> { %v1312_v47 = vmul.f32 %v1306_v43, %v3222_v16 }
 0x5f8   : >> { %v1647_v34 = vpop.permute.xlu0 %1646  ;;  %v1652_v35 = vpop.permute.xlu1 %1651 }
 0x5fa   : >> { %v2828_v48 = vpop.eup %2827 }
 0x5fb   : >> { %v1617_v52 = vadd.f32 1.0, %v2828_v48  ;;  %v2830_v53 = vpop.eup %2829  ;;  %v1311_v48 = vmul.f32 %v1303_v44, %v3222_v16 }
 0x5fc   : >> { %v1615_v59 = vadd.f32 1.0, %v2830_v53  ;;  %v2832_v13 = vpop.eup %2831  ;;  %v1657_v36 = vpop.permute.xlu0 %1656 }
 0x5fd   : >> { %2837 = vrcp.f32 %v1617_v52  ;;  %v1618_v18 = vadd.f32 1.0, %v2832_v13  ;;  %v2834_v19 = vpop.eup %2833  ;;  %v1662_v37 = vpop.permute.xlu1 %1661  ;;  %v1335_v13 = vadd.f32 %v2999_v20, %v1312_v47 }
 0x5fe   : >> { %2839 = vtanh.f32 %v1491_v49  ;;  %v1616_v60 = vadd.f32 1.0, %v2834_v19  ;;  %v2836_v61 = vpop.eup %2835 }
 0x5ff   : >> { %2841 = vrcp.f32 %v1615_v59 }
 0x600   : >> { %2843 = vtanh.f32 %v1494_v58  ;;  %v1747_v38 = vpop.permute.xlu0 %1746 }
 0x601   : >> { %2845 = vrcp.f32 %v1618_v18  ;;  %v1752_v42 = vpop.permute.xlu1 %1751 }
 0x602   : >> { %2847 = vtanh.f32 %v1492_v15  ;;  %v1334_v15 = vadd.f32 %v3003_v21, %v1311_v48 }
 0x603   : >> { %2849 = vrcp.f32 %v1616_v60 }
 0x604   : >> { %v1757_v49 = vpop.permute.xlu0 %1756 }
 0x605   : >> { %v1762_v50 = vpop.permute.xlu1 %1761 }
 0x607   : >> { %v2838_v63 = vpop.eup %2837 }
 0x608   : >> { %v2840_v0 = vpop.eup %2839  ;;  %v1629_v1 = vmul.f32 %v2838_v63, %v2836_v61 }
 0x609   : >> { %v2842_v3 = vpop.eup %2841 }
 0x60a   : >> { %v2844_v6 = vpop.eup %2843  ;;  %v1627_v8 = vmul.f32 %v2842_v3, %v2840_v0 }
 0x60b   : >> { %v2846_v11 = vpop.eup %2845 }
 0x60c   : >> { %v2848_v12 = vpop.eup %2847  ;;  %v1630_v14 = vmul.f32 %v2846_v11, %v2844_v6  ;;  %v1842_v6 = vpop.permute.xlu0 %1841 }
 0x60d   : >> { %v2850_v17 = vpop.eup %2849 }
 0x60e   : >> { %v1628_v24 = vmul.f32 %v2850_v17, %v2848_v12  ;;  %v1632_v25 = vpack.c.bf16 %v1630_v14, %v1629_v1 }
 0x610   : >> { %v1631_v26 = vpack.c.bf16 %v1628_v24, %v1627_v8  ;;  %v1869_v51 = vpop.permute.xlu0 (%p808_p11), %1868 }
 0x612   : >> { %2575 = vmatprep.subr.bf16.mxu0 %v1631_v26  ;;  %2583 = vmatprep.subr.bf16.mxu1 %v1631_v26 }
 0x613   : >> { %2576 = vmatpush3.bf16.msra.mxu0 %v1631_v26  ;;  %2584 = vmatpush3.bf16.msra.mxu1 %v1631_v26 }
 0x614   : >> { %2577 = vmatprep.subr.bf16.mxu0 %v1632_v25  ;;  %2585 = vmatprep.subr.bf16.mxu1 %v1632_v25 }
 0x617   : >> { %2578 = vmatpush3.bf16.msra.mxu0 %v1632_v25  ;;  %2586 = vmatpush3.bf16.msra.mxu1 %v1632_v25 }
 0x61a   : >> { %2580 = vmatmul.mubr.msk.bf16.vlgmr.msra.gmra.mrb[12].mxu0 %vm1153_vm11, %v2801_v27  ;;  %2588 = vmatmul.mubr.msk.bf16.vlgmr.msra.gmra.mrb[12].mxu1 %vm1153_vm11, %v2802_v28 }
 0x6ed   : >> { %v2581_v52 = vpop.f32.mrb[12].mxu0  ;;  %v2589_v53 = vpop.f32.mrb[12].mxu1 }
 0x6ee   : >> { %v1723_v58 = vadd.f32 %v2581_v52, %v1657_v36  ;;  %v1823_v7 = vadd.f32 %v2589_v53, %v1757_v49  ;;  %v1714_v59 = vpop.f32.mrb[13].mxu0  ;;  %v1814_v4 = vpop.f32.mrb[13].mxu1 }
 0x6ef   : >> { %v1715_v18 = vadd.f32 %v1714_v59, %v1647_v34  ;;  %v1815_v19 = vadd.f32 %v1814_v4, %v1747_v38  ;;  %v2582_v60 = vpop.f32.mrb[14].mxu0  ;;  %v2590_v61 = vpop.f32.mrb[14].mxu1 }
 0x6f0   : >> { %v1731_v63 = vmul.f32 %v1723_v58, %v3222_v16  ;;  %v1831_v0 = vmul.f32 %v1823_v7, %v3222_v16  ;;  %v1726_v1 = vadd.f32 %v2582_v60, %v1662_v37  ;;  %v1826_v22 = vadd.f32 %v2590_v61, %v1762_v50  ;;  %v1717_v3 = vpop.f32.mrb[15].mxu0  ;;  %v1817_v23 = vpop.f32.mrb[15].mxu1 }
 0x6f1   : >> { %v1729_v8 = vmul.f32 %v1715_v18, %v3222_v16  ;;  %v1829_v11 = vmul.f32 %v1815_v19, %v3222_v16  ;;  %v1718_v20 = vadd.f32 %v1717_v3, %v1652_v35  ;;  %v1818_v12 = vadd.f32 %v1817_v23, %v1752_v42  ;;  %810 = sbr.rel (!%p808_p11) target bundleno = 529 (0x211), region = 168 }
 0x6f2   : >> { %v1846_v21 = vmul.f32 %v1842_v6, %v1731_v63  ;;  %v1854_v14 = vadd.f32 %v1831_v0, %v1334_v15   ;;  %v1732_v17 = vmul.f32 %v1726_v1, %v3222_v16  ;;  %v1832_v24 = vmul.f32 %v1826_v22, %v3222_v16 }
 0x6f3   : >> { %v1844_v25 = vmul.f32 %v1842_v6, %v1729_v8  ;;  %v1852_v26 = vadd.f32 %v1829_v11, %v1332_v5   ;;  %v1730_v27 = vmul.f32 %v1718_v20, %v3222_v16  ;;  %v1830_v28 = vmul.f32 %v1818_v12, %v3222_v16  ;;  %v1863_v16 = vld [vmem:[%s3751_s16 + $0x8] sm:$0xff] (%p808_p11) }
 0x6f4   : >> { %v1850_v29 = vadd.f32 %v1846_v21, %v3481_v54   ;;  %v1847_v30 = vmul.f32 %v1842_v6, %v1732_v17  ;;  %v1855_v31 = vadd.f32 %v1832_v24, %v1335_v13   ;;  %v3796_v21 = vmov %v1854_v14  ;;  %1873 = vperm.xlu0 (%p808_p11), %2851, %v1863_v16  }
 0x6f5   : >> { %v1848_v15 = vadd.f32 %v1844_v25, %v3487_v56   ;;  %v1845_v32 = vmul.f32 %v1842_v6, %v1730_v27  ;;  %v1853_v34 = vadd.f32 %v1830_v28, %v1333_v9   ;;  %v3798_v23 = vmov %v1852_v26  ;;  %v2853_v56 = vld [vmem:[%s3750_s15] sm:$0xff] (%p808_p11)  }
 0x6f6   : >> { %v1851_v18 = vadd.f32 %v1847_v30, %v3484_v55   ;;  %v3795_v20 = vmov %v1855_v31  ;;  %v3799_v13 = vmov %v1850_v29  ;;  %v1861_v55 = vpack.c.bf16 (%p808_p11), %v1855_v31, %v1854_v14  ;;  %2595 = vmatprep.mubr.msk.bf16.mxu0 (%p808_p11), %vm1153_vm11, %v2853_v56 }
 0x6f7   : >> { %v1849_v19 = vadd.f32 %v1845_v32, %v3490_v57   ;;  %v3797_v22 = vmov %v1853_v34  ;;  %v1860_v54 = vpack.c.bf16 (%p808_p11), %v1853_v34, %v1852_v26  ;;  %v1864_v57 = vld [vmem:[%s3751_s16 + $0x10] sm:$0xff] (%p808_p11) }
 0x6f8   : > { %1878 = vperm.xlu1 %2852, %v1864_v57  }
 0x6f9   : > { %2591 = vmatprep.subr.bf16.mxu0 %v1860_v54 }
 0x6fa   : > { %2592 = vmatpush3.bf16.msra.mxu0 %v1860_v54 }
 0x6fb   : > { %2593 = vmatprep.subr.bf16.mxu0 %v1861_v55 }
 0x6fc   : > { %1883 = vperm.xlu1 %2852, %v1865_v2  }
 0x6fe   : > { %2594 = vmatpush3.bf16.msra.mxu0 %v1861_v55 }
 0x701   : > { %2596 = vmatmul.mubr.msk.bf16.vlgmr.msra.gmra.mrb[0].mxu0 %vm1153_vm11, %v2854_v33 }
 0x773   : > { %v1874_v41 = vpop.permute.xlu0 %1873 }
 0x777   : > { %v1879_v39 = vpop.permute.xlu1 %1878 }
 0x77b   : > { %v1884_v37 = vpop.permute.xlu1 %1883 }
 0x7d4   : > { %v2597_v62 = vpop.f32.mrb[0].mxu0 }
 0x7d5   : > { %v1946_v35 = vadd.f32 %v2597_v62, %v1879_v39  ;;  %v1937_v36 = vpop.f32.mrb[1].mxu0 }
 0x7d6   : > { %v1938_v38 = vadd.f32 %v1937_v36, %v1869_v51  ;;  %v2598_v40 = vpop.f32.mrb[2].mxu0 }
 0x7d7   : > { %1954 = vst [vmem:[%s3290_s26 + $0x10] sm:$0xff] %v1946_v35  ;;  %v1949_v42 = vadd.f32 %v2598_v40, %v1884_v37  ;;  %v1940_v43 = vpop.f32.mrb[3].mxu0 }
 0x7d8   : > { %1952 = vst [vmem:[%s3290_s26] sm:$0xff] %v1938_v38  ;;  %v1941_v44 = vadd.f32 %v1940_v43, %v1874_v41 }
 0x7d9   : > { %1955 = vst [vmem:[%s3290_s26 + $0x18] sm:$0xff] %v1949_v42  ;;  %v1957_v45 = vmax.f32 %v1946_v35, %v1949_v42 }
 0x7da   : > { %1953 = vst [vmem:[%s3290_s26 + $0x8] sm:$0xff] %v1941_v44  ;;  %v1956_v46 = vmax.f32 %v1938_v38, %v1941_v44 }
 0x7db   : > { %2878 = shalt.err (!%p2875_p4)
}
 0x7dc   : > { %s2879_s26 = scalar_lea.hbm %s3643_s5, 512  ;;  %s2883_s3 = scalar_lea.hbm %s3752_s17, 1024 }
 0x7dd   : > { %p2880_p7 = scmp.ne.s32.totalorder %s3643_s5, %s2879_s26  ;;  %p2884_p10 = scmp.lt.u32.totalorder %s3643_s5, %s3752_s17 }
 0x7de   : > { %p2885_p11 = scmp.lt.u32.totalorder %s2883_s3, %s2879_s26  ;;  %p2887_p13 = scmp.lt.u32.totalorder %s2879_s26, %s3643_s5 }
 0x7df   : > { %p2881_p8 = pnand %p2880_p7, %p3180_p5 }
 0x7e0   : > { %p2886_p12 = por %p2885_p11, %p2884_p10 }
 0x7e1   : > { %p2882_p9 = pneg %p2881_p8 }
 0x7e2   : > { %p2888_p0 = por %p2887_p13, %p2886_p12 }
 0x7e4   : > { %p2889_p1 = pnand %p2888_p0, %p2882_p9 }
 0x7e6   : > { %2892 = shalt.err (!%p2889_p1)
}
 0x7e7   : > { %s3044_s25 = smov 128   ;;  %s3045_s4 = smov 8   ;;  %v1958_v47 = vmax.f32 %v1956_v46, %v1957_v45 }
 0x7e8   : > { %2599 = dma.vmem_to_hbm [thread:$0]  (%p3180_p5), %s3645_s23, 512, %s3643_s5, %s1997_s6, %s3044_s25, %s3044_s25, %s3045_s4  }
 0x7e9   : > { %v1959_v48 = vrot.slane %v1958_v47, 4  ;;  %s2031_s23 = sshll.u32 %s3294_s19, 4  ;;  %s3683_s8 = scalar_lea.hbm %s3753_s18, %s2426_s21  ;;  %s3685_s23 = int_to_ptr.vmem [resolvable:$true] %s2031_s23 }
 0x7ea   : > { %s2002_s9 = scalar_lea.sflag [#allocation5], %s3217_s29  ;;  %s2893_s22 = scalar_lea.vmem %s3685_s23, 512 }
 0x7eb   : > { %v1960_v49 = vmax.f32 %v1958_v47, %v1959_v48  ;;  %p2894_p2 = scmp.ne.s32.totalorder %s3685_s23, %s2893_s22  ;;  %s3046_s0 = smov [#allocation4]  }
 0x7ec   : > { %s2897_s1 = sshll.u32 %s3046_s0, 4  ;;  %s2898_s1 = int_to_ptr.vmem [resolvable:$false] %s2897_s1 }
 0x7ed   : > { %v1961_v50 = vrot.slane %v1960_v49, 2  ;;  %p2895_p3 = pnand %p2894_p2, %p3180_p5  ;;  %s2899_s21 = scalar_lea.vmem %s2898_s1, 1024 }
 0x7ee   : > { %p2900_p7 = scmp.lt.s32.totalorder %s3685_s23, %s2898_s1  ;;  %p2901_p8 = scmp.lt.s32.totalorder %s2899_s21, %s2893_s22 }
 0x7ef   : > { %v1962_v52 = vmax.f32 %v1960_v49, %v1961_v50  ;;  %p2896_p4 = pneg %p2895_p3 }
 0x7f0   : > { %p2902_p9 = por %p2901_p8, %p2900_p7 }
 0x7f1   : > { %v1963_v53 = vrot.slane %v1962_v52, 1 }
 0x7f2   : > { %p2903_p10 = pnand %p2902_p9, %p2896_p4 }
 0x7f3   : > { %v1964_v9 = vmax.f32 %v1962_v52, %v1963_v53 }
 0x7f5   : > { %v1965_v5 = vsub.f32 %v1938_v38, %v1964_v9  ;;  %v1966_v58 = vsub.f32 %v1941_v44, %v1964_v9  ;;  %v1967_v7 = vsub.f32 %v1946_v35, %v1964_v9  ;;  %v1968_v59 = vsub.f32 %v1949_v42, %v1964_v9 }
 0x7f7   : > { %v1969_v4 = vmul.f32 1.442695, %v1965_v5  ;;  %v1971_v13 = vmul.f32 1.442695, %v1966_v58  ;;  %v1973_v15 = vmul.f32 1.442695, %v1967_v7 }
 0x7f8   : > { %v1975_v18 = vmul.f32 1.442695, %v1968_v59 }
 0x7f9   : > { %2855 = vpow2.f32 %v1969_v4 }
 0x7fa   : > { %2857 = vpow2.f32 %v1971_v13 }
 0x7fb   : > { %2859 = vpow2.f32 %v1973_v15 }
 0x7fc   : > { %2861 = vpow2.f32 %v1975_v18 }
 0x803   : > { %v2856_v19 = vpop.eup %2855 }
 0x804   : > { %v2858_v60 = vpop.eup %2857 }
 0x805   : > { %v1977_v61 = vadd.f32 %v2858_v60, %v2856_v19  ;;  %v2860_v63 = vpop.eup %2859 }
 0x806   : > { %v2862_v1 = vpop.eup %2861 }
 0x807   : > { %v1978_v0 = vadd.f32 %v2860_v63, %v1977_v61 }
 0x809   : > { %v1979_v22 = vadd.f32 %v2862_v1, %v1978_v0 }
 0x80b   : > { %v1980_v3 = vrot.slane %v1979_v22, 4 }
 0x80d   : > { %v1981_v23 = vadd.f32 %v1980_v3, %v1979_v22 }
 0x80f   : > { %v1982_v6 = vrot.slane %v1981_v23, 2 }
 0x811   : > { %v1983_v8 = vadd.f32 %v1982_v6, %v1981_v23 }
 0x813   : > { %v1984_v11 = vrot.slane %v1983_v8, 1 }
 0x815   : > { %v1985_v20 = vadd.f32 %v1984_v11, %v1983_v8 }
 0x817   : > { %2863 = vlog2.f32 %v1985_v20 }
 0x821   : > { %v2864_v12 = vpop.eup %2863 }
 0x822   : > { %v1987_v21 = vmul.f32 0.6931472, %v2864_v12 }
 0x824   : > { %v1989_v14 = vsub.f32 %v1966_v58, %v1987_v21  ;;  %v1988_v17 = vsub.f32 %v1965_v5, %v1987_v21  ;;  %v1990_v24 = vsub.f32 %v1967_v7, %v1987_v21  ;;  %v1991_v25 = vsub.f32 %v1968_v59, %v1987_v21 }
 0x826   : > { %1993 = vst [vmem:[%s3294_s19 + $0x8] sm:$0xff] %v1989_v14  ;;  %1992 = vst [vmem:[%s3294_s19] sm:$0xff] %v1988_v17 }
 0x827   : > { %1994 = vst [vmem:[%s3294_s19 + $0x10] sm:$0xff] %v1990_v24  ;;  %1995 = vst [vmem:[%s3294_s19 + $0x18] sm:$0xff] %v1991_v25 }
 0x828   : > { %2906 = shalt.err (!%p2903_p10)
}
 0x829   : > { %s2907_s19 = scalar_lea.hbm %s3683_s8, 512  ;;  %s2911_s27 = scalar_lea.hbm %s3753_s18, 1024 }
 0x82a   : > { %p2908_p11 = scmp.ne.s32.totalorder %s3683_s8, %s2907_s19  ;;  %p2912_p0 = scmp.lt.u32.totalorder %s3683_s8, %s3753_s18 }
 0x82b   : > { %p2913_p1 = scmp.lt.u32.totalorder %s2911_s27, %s2907_s19  ;;  %p2915_p3 = scmp.lt.u32.totalorder %s2907_s19, %s3683_s8 }
 0x82c   : > { %p2909_p12 = pnand %p2908_p11, %p3180_p5 }
 0x82d   : > { %p2914_p2 = por %p2913_p1, %p2912_p0 }
 0x82e   : > { %p2910_p13 = pneg %p2909_p12 }
 0x82f   : > { %p2916_p4 = por %p2915_p3, %p2914_p2 }
 0x831   : > { %p2917_p7 = pnand %p2916_p4, %p2910_p13 }
 0x833   : > { %2920 = shalt.err (!%p2917_p7)
}
 0x834   : > { %2600 = dma.vmem_to_hbm [thread:$0]  (%p3180_p5), %s3685_s23, 512, %s3683_s8, %s2002_s9, %s3044_s25, %s3044_s25, %s3045_s4  }
 0x835 PF: > { %s3800_s7 = sld [smem:[#allocation10_spill]]  ;;  %s3801_s5 = sld [smem:[#allocation8_spill]] }
 0x83b   : > { %p2610_p8 = scmp.ge.s32.totalorder %s3800_s7, 2  ;;  %s2046_s22 = sand.u32 1, %s3801_s5  }
 0x83c   : > { %s2047_s0 = scalar_lea.sflag [#allocation3], %s2046_s22 }
 0x83d   : > { %p2604_p9 = pnand %p2610_p8, %p3184_p6 }
 0x83f   : > { %2974 = dma.done.wait (!%p2604_p9), %s2047_s0, 512  }
 0x840   : > { %2976 = vsyncadd (!%p2604_p9), %s2047_s0, 4294966784  ;;  %s2056_s2 = scalar_lea.sflag [#allocation5], %s2046_s22 }
 0x841   : > { %2978 = dma.done.wait (!%p2604_p9), %s2056_s2, 512  }
 0x842   : > { %2980 = vsyncadd (!%p2604_p9), %s2056_s2, 4294966784  ;;  %s3803_s30 = sld [smem:[#allocation11_spill]]  ;;  %s3804_s29 = sld [smem:[#allocation9_spill]] }
 0x843   : > { %s3805_s1 = sld [smem:[#allocation12_spill]]  ;;  %s3806_s27 = smov %s2987_s28 }
 0x848   : > { %p32_p5 = scmp.ge.s32.totalorder %s3803_s30, 4   ;;  %s3807_s28 = smov %s3804_s29 }
 0x849   : > { %s3808_s29 = smov %s3805_s1 }
 0x84a   :  { %34 = sbr.rel (!%p32_p5) target bundleno = 16 (0x10), region = 179 }
 0x851   :  { %2061 = vsyncpa [#allocation3], 1 }
 0x852   :  { %2063 = vsyncpa [#allocation3 + $0x1], 1 }
 0x853   :  { %2064 = vsyncpa [#allocation5], 1 }
 0x854   :  { %2066 = vsyncpa [#allocation5 + $0x1], 1 }

</bundles_post_ra>
